<compile_context>
chip_gen: v5e
topology: v5e:2x2
jax: 0.10.0
libtpu: 0.0.40
codegen_flags: <defaults>
</compile_context>

<pallas_src>
import functools

import jax
import jax.numpy as jnp
from jax.experimental import pallas as pl
from jax.experimental.pallas import tpu as pltpu

LANE = 128


def _round_up(x, m):
    return (x + m - 1) // m * m


# ----------------------------------------------------------------------------
# Pallas kernel: fused input matmul + GRU recurrence + MLP head, single launch.
# ----------------------------------------------------------------------------
def _gru_encoder_kernel(x_ref, wih_ref, whh_ref, gib_ref, bhhn_ref,
                        w1_ref, b1_ref, w2_ref, b2_ref, out_ref, gi_scratch,
                        *, num_steps, batch, hp):
    # Prologue: input-side matmul for ALL timesteps at once (biases prefolded),
    # written to VMEM scratch so the serial loop only does h @ W_hh + gate math.
    gi_scratch[...] = (
        jnp.dot(x_ref[...], wih_ref[...], preferred_element_type=jnp.float32)
        + gib_ref[...])

    # Loop-invariant loads hoisted out of the serial time loop.
    whh = whh_ref[...]          # (Hp, 3*Hp)
    bhh_n = bhhn_ref[...]       # (1, Hp) -- n-gate recurrent bias only

    def step(t, h):
        start = pl.multiple_of(t * batch, batch)
        gi = gi_scratch[pl.ds(start, batch), :]                  # (B, 3*Hp)
        gh = jnp.dot(h, whh, preferred_element_type=jnp.float32)  # (B, 3*Hp)
        # Lane-aligned gate blocks; sigmoid via tanh identity (single EUP push).
        r = 0.5 + 0.5 * jnp.tanh(0.5 * (gi[:, 0 * hp:1 * hp] + gh[:, 0 * hp:1 * hp]))
        z = 0.5 + 0.5 * jnp.tanh(0.5 * (gi[:, 1 * hp:2 * hp] + gh[:, 1 * hp:2 * hp]))
        n = jnp.tanh(gi[:, 2 * hp:3 * hp] + r * (gh[:, 2 * hp:3 * hp] + bhh_n))
        # Padded lanes: gi = gh = 0 -> r = z = 0.5, n = 0 -> h stays exactly 0.
        return (1.0 - z) * n + z * h

    h0 = jnp.zeros((batch, hp), jnp.float32)                     # PyTorch GRU h0 = 0
    h_last = jax.lax.fori_loop(0, num_steps, step, h0, unroll=True)

    # hiddens_to_z0: Linear(H,50) -> Tanh -> Linear(50, 2L), run once post-loop.
    y1 = jnp.tanh(jnp.dot(h_last, w1_ref[...], preferred_element_type=jnp.float32)
                  + b1_ref[...])
    out_ref[...] = (jnp.dot(y1, w2_ref[...], preferred_element_type=jnp.float32)
                    + b2_ref[...])                               # lane-dense (B, 128)


# ----------------------------------------------------------------------------
# One-time parameter preparation (padding / folding) -- hoisted out of forward.
# ----------------------------------------------------------------------------
def prepare_params(params):
    f32 = jnp.float32
    w_ih = jnp.asarray(params["w_ih"], f32)   # (3H, D)
    w_hh = jnp.asarray(params["w_hh"], f32)   # (3H, H)
    b_ih = jnp.asarray(params["b_ih"], f32)   # (3H,)
    b_hh = jnp.asarray(params["b_hh"], f32)   # (3H,)
    H = w_hh.shape[1]
    D = w_ih.shape[1]
    W1 = params["w1"].shape[0]
    OUT = params["w2"].shape[0]

    Hp = _round_up(H, LANE)
    Dp = _round_up(D, LANE)
    W1p = _round_up(W1, LANE)
    OUTp = _round_up(OUT, LANE)

    # Lane-aligned, gate-padded weights: gate g occupies lanes [g*Hp, g*Hp + H).
    wih_p = jnp.zeros((Dp, 3 * Hp), f32)
    whh_p = jnp.zeros((Hp, 3 * Hp), f32)
    for g in range(3):
        wih_p = wih_p.at[:D, g * Hp:g * Hp + H].set(w_ih[g * H:(g + 1) * H, :].T)
        whh_p = whh_p.at[:H, g * Hp:g * Hp + H].set(w_hh[g * H:(g + 1) * H, :].T)

    # Fold b_ih fully (and b_hh for the r/z gates, which are plain sums) into GI.
    gib = jnp.zeros((1, 3 * Hp), f32)
    gib = gib.at[0, 0 * Hp:0 * Hp + H].set(b_ih[0 * H:1 * H] + b_hh[0 * H:1 * H])
    gib = gib.at[0, 1 * Hp:1 * Hp + H].set(b_ih[1 * H:2 * H] + b_hh[1 * H:2 * H])
    gib = gib.at[0, 2 * Hp:2 * Hp + H].set(b_ih[2 * H:3 * H])
    # b_hh for the n gate must remain inside r * (h @ W_hn + b_hn): keep only that block.
    bhh_n = jnp.zeros((1, Hp), f32).at[0, :H].set(b_hh[2 * H:3 * H])

    # Head weights, padded to full 128-lane blocks (padded lanes compute to exact 0).
    w1_p = jnp.zeros((Hp, W1p), f32).at[:H, :W1].set(jnp.asarray(params["w1"], f32).T)
    b1_p = jnp.zeros((1, W1p), f32).at[0, :W1].set(jnp.asarray(params["b1"], f32))
    w2_p = jnp.zeros((W1p, OUTp), f32).at[:W1, :OUT].set(jnp.asarray(params["w2"], f32).T)
    b2_p = jnp.zeros((1, OUTp), f32).at[0, :OUT].set(jnp.asarray(params["b2"], f32))

    return {"wih": wih_p, "whh": whh_p, "gib": gib, "bhhn": bhh_n,
            "w1": w1_p, "b1": b1_p, "w2": w2_p, "b2": b2_p}


# ----------------------------------------------------------------------------
# Preprocessing glue (matches the PyTorch forward) + jitted pallas_call wrapper.
# ----------------------------------------------------------------------------
def _preprocess(data, time_steps, run_backwards, use_delta_t):
    # data: (n_traj, n_tp, input_dim), time_steps: (n_tp,)
    B, T, _ = data.shape
    x = jnp.transpose(data, (1, 0, 2))          # (T, B, input_dim)
    if run_backwards:
        x = x[::-1]
    if use_delta_t:
        dt = time_steps[1:] - time_steps[:-1]   # (T-1,)
        if run_backwards:
            dt = dt[::-1]
        dt = jnp.concatenate([dt, jnp.zeros((1,), dt.dtype)])   # (T,)
        dt = jnp.broadcast_to(dt[:, None, None], (T, B, 1))
        x = jnp.concatenate([dt, x], axis=-1)   # (T, B, input_dim + 1)
    return x.astype(jnp.float32)


@functools.partial(jax.jit, static_argnames=("latent_dim", "run_backwards", "use_delta_t"))
def encoder_z0_forward(data, time_steps, prep, *, latent_dim,
                       run_backwards=True, use_delta_t=True):
    x = _preprocess(data, time_steps, run_backwards, use_delta_t)   # (T, B, D)
    T, B, D = x.shape
    Dp = prep["wih"].shape[0]
    Hp = prep["whh"].shape[0]
    W1p = prep["w1"].shape[1]
    OUTp = prep["b2"].shape[1]

    # Pad feature dim to one lane block and flatten time*batch for the fused GI matmul.
    x_p = jnp.zeros((T * B, Dp), jnp.float32).at[:, :D].set(x.reshape(T * B, D))

    kernel = functools.partial(_gru_encoder_kernel, num_steps=T, batch=B, hp=Hp)

    def full_spec(shape):
        zeros = (0,) * len(shape)
        return pl.BlockSpec(shape, lambda i, _z=zeros: _z)

    flops = (2 * T * B * Dp * 3 * Hp            # fused input matmul
             + 2 * T * B * Hp * 3 * Hp          # recurrence
             + 2 * B * (Hp * W1p + W1p * OUTp)) # head
    transcendentals = 3 * T * B * Hp + B * W1p
    bytes_accessed = 4 * (x_p.size + prep["wih"].size + prep["whh"].size
                          + prep["gib"].size + prep["bhhn"].size + prep["w1"].size
                          + prep["b1"].size + prep["w2"].size + prep["b2"].size
                          + B * OUTp)

    out = pl.pallas_call(
        kernel,
        out_shape=jax.ShapeDtypeStruct((B, OUTp), jnp.float32),
        grid_spec=pltpu.PrefetchScalarGridSpec(
            num_scalar_prefetch=0,
            grid=(1,),                                   # single launch; loops are in-kernel
            in_specs=[
                full_spec(x_p.shape),
                full_spec(prep["wih"].shape),
                full_spec(prep["whh"].shape),
                full_spec(prep["gib"].shape),
                full_spec(prep["bhhn"].shape),
                full_spec(prep["w1"].shape), full_spec(prep["b1"].shape),
                full_spec(prep["w2"].shape), full_spec(prep["b2"].shape),
            ],
            out_specs=full_spec((B, OUTp)),
            scratch_shapes=[pltpu.VMEM((T * B, 3 * Hp), jnp.float32)],
        ),
        compiler_params=pltpu.CompilerParams(dimension_semantics=("arbitrary",)),
        cost_estimate=pl.CostEstimate(flops=int(flops),
                                      transcendentals=int(transcendentals),
                                      bytes_accessed=int(bytes_accessed)),
    )(x_p, prep["wih"], prep["whh"], prep["gib"], prep["bhhn"],
      prep["w1"], prep["b1"], prep["w2"], prep["b2"])

    # Split the single lane-dense output; std = |.|  (matches utils.split_last_dim).
    mean = out[:, :latent_dim]
    std = jnp.abs(out[:, latent_dim:2 * latent_dim])
    # Matches torch: mean.unsqueeze(0), std.unsqueeze(0)
    return mean[None], std[None]


# ----------------------------------------------------------------------------
# Pure-JAX reference (same math, unpadded) for correctness checking.
# ----------------------------------------------------------------------------
def encoder_z0_reference(data, time_steps, params, run_backwards=True, use_delta_t=True):
    x = _preprocess(data, time_steps, run_backwards, use_delta_t)
    T, B, D = x.shape
    H = params["w_hh"].shape[1]
    L = params["w2"].shape[0] // 2

    def step(h, xt):
        gi = xt @ params["w_ih"].T + params["b_ih"]
        gh = h @ params["w_hh"].T + params["b_hh"]
        r = jax.nn.sigmoid(gi[:, :H] + gh[:, :H])
        z = jax.nn.sigmoid(gi[:, H:2 * H] + gh[:, H:2 * H])
        n = jnp.tanh(gi[:, 2 * H:] + r * gh[:, 2 * H:])
        return (1.0 - z) * n + z * h, None

    h_last, _ = jax.lax.scan(step, jnp.zeros((B, H), jnp.float32), x)
    y1 = jnp.tanh(h_last @ params["w1"].T + params["b1"])
    y2 = y1 @ params["w2"].T + params["b2"]
    return y2[:, :L][None], jnp.abs(y2[:, L:])[None]


# ----------------------------------------------------------------------------
# Deterministic parameter construction (shapes follow the PyTorch __init__).
# ----------------------------------------------------------------------------
def make_params(key, input_dim, hidden, latent_dim, use_delta_t=True):
    d = input_dim + (1 if use_delta_t else 0)
    ks = jax.random.split(key, 8)
    nrm = lambda k, shape, s: (s * jax.random.normal(k, shape)).astype(jnp.float32)
    return {
        # GRU(input_dim(+1) -> hidden)
        "w_ih": nrm(ks[0], (3 * hidden, d), 0.1),
        "w_hh": nrm(ks[1], (3 * hidden, hidden), 0.1),
        "b_ih": nrm(ks[2], (3 * hidden,), 0.01),
        "b_hh": nrm(ks[3], (3 * hidden,), 0.01),
        # hiddens_to_z0: Linear(hidden, 50) -> Tanh -> Linear(50, 2*latent)
        "w1": nrm(ks[4], (50, hidden), 0.1),
        "b1": nrm(ks[5], (50,), 0.01),
        "w2": nrm(ks[6], (2 * latent_dim, 50), 0.1),
        "b2": nrm(ks[7], (2 * latent_dim,), 0.01),
    }


if __name__ == "__main__":
    # Small shapes consistent with the module's forward:
    #   data: (n_traj, n_tp, input_dim), time_steps: (n_tp,)
    B, T, INPUT_DIM = 8, 8, 4
    HIDDEN, LATENT = 20, 6

    key = jax.random.PRNGKey(0)
    k_data, k_params = jax.random.split(key)
    data = jax.random.normal(k_data, (B, T, INPUT_DIM), dtype=jnp.float32)
    time_steps = jnp.linspace(0.0, 1.0, T, dtype=jnp.float32)
    params = make_params(k_params, INPUT_DIM, HIDDEN, LATENT)

    # One-time padding / folding of parameters (hoisted out of the forward).
    prep = prepare_params(params)

    mean, std = encoder_z0_forward(data, time_steps, prep, latent_dim=LATENT,
                                   run_backwards=True, use_delta_t=True)
    jax.block_until_ready((mean, std))

    mean_ref, std_ref = encoder_z0_reference(data, time_steps, params, run_backwards=True)
    assert mean.shape == (1, B, LATENT) and std.shape == (1, B, LATENT)
    assert jnp.allclose(mean, mean_ref, atol=1e-4, rtol=1e-4)
    assert jnp.allclose(std, std_ref, atol=1e-4, rtol=1e-4)
    assert bool(jnp.all(std >= 0))

    print("KERNEL_OK")
</pallas_src>

<mosaic_0001>
module attributes {stable_mosaic.version = 11 : i64} {
  func.func @_gru_encoder_kernel(%arg0: i32, %arg1: memref<64x128xf32, #tpu.memory_space<vmem>>, %arg2: memref<128x384xf32, #tpu.memory_space<vmem>>, %arg3: memref<128x384xf32, #tpu.memory_space<vmem>>, %arg4: memref<1x384xf32, #tpu.memory_space<vmem>>, %arg5: memref<1x128xf32, #tpu.memory_space<vmem>>, %arg6: memref<128x128xf32, #tpu.memory_space<vmem>>, %arg7: memref<1x128xf32, #tpu.memory_space<vmem>>, %arg8: memref<128x128xf32, #tpu.memory_space<vmem>>, %arg9: memref<1x128xf32, #tpu.memory_space<vmem>>, %arg10: memref<8x128xf32, #tpu.memory_space<vmem>>, %arg11: memref<64x384xf32, #tpu.memory_space<vmem>>) attributes {dimension_semantics = [#tpu.dimension_semantics<arbitrary>], iteration_bounds = array<i64: 1>, scalar_prefetch = 0 : i64, scratch_operands = 1 : i64, tpu.core_type = #tpu.core_type<tc>, window_params = [{pipeline_mode = #tpu.pipeline_mode<synchronous>, transform_indices = @transform_0, window_bounds = array<i64: 64, 128>}, {pipeline_mode = #tpu.pipeline_mode<synchronous>, transform_indices = @transform_1, window_bounds = array<i64: 128, 384>}, {pipeline_mode = #tpu.pipeline_mode<synchronous>, transform_indices = @transform_2, window_bounds = array<i64: 128, 384>}, {pipeline_mode = #tpu.pipeline_mode<synchronous>, transform_indices = @transform_3, window_bounds = array<i64: 1, 384>}, {pipeline_mode = #tpu.pipeline_mode<synchronous>, transform_indices = @transform_4, window_bounds = array<i64: 1, 128>}, {pipeline_mode = #tpu.pipeline_mode<synchronous>, transform_indices = @transform_5, window_bounds = array<i64: 128, 128>}, {pipeline_mode = #tpu.pipeline_mode<synchronous>, transform_indices = @transform_6, window_bounds = array<i64: 1, 128>}, {pipeline_mode = #tpu.pipeline_mode<synchronous>, transform_indices = @transform_7, window_bounds = array<i64: 128, 128>}, {pipeline_mode = #tpu.pipeline_mode<synchronous>, transform_indices = @transform_8, window_bounds = array<i64: 1, 128>}, {pipeline_mode = #tpu.pipeline_mode<synchronous>, transform_indices = @transform_9, window_bounds = array<i64: 8, 128>}]} {
    %c0 = arith.constant 0 : index
    %c0_0 = arith.constant 0 : index
    %0 = vector.load %arg1[%c0, %c0_0] : memref<64x128xf32, #tpu.memory_space<vmem>>, vector<64x128xf32>
    %c0_1 = arith.constant 0 : index
    %c0_2 = arith.constant 0 : index
    %1 = vector.load %arg2[%c0_1, %c0_2] : memref<128x384xf32, #tpu.memory_space<vmem>>, vector<128x384xf32>
    %cst = arith.constant dense<0.000000e+00> : vector<64x384xf32>
    %2 = tpu.matmul %0, %1, %cst {dimension_numbers = #tpu.dot_dimension_numbers<[1], [0], [0], [1], [0, 0, 1, 1], [], []>} : vector<64x128xf32>, vector<128x384xf32>, vector<64x384xf32> -> vector<64x384xf32>
    %c0_3 = arith.constant 0 : index
    %c0_4 = arith.constant 0 : index
    %3 = vector.load %arg4[%c0_3, %c0_4] : memref<1x384xf32, #tpu.memory_space<vmem>>, vector<1x384xf32>
    %4 = vector.broadcast %3 : vector<1x384xf32> to vector<64x384xf32>
    %5 = arith.addf %2, %4 : vector<64x384xf32>
    %c0_5 = arith.constant 0 : index
    %c0_6 = arith.constant 0 : index
    %6 = vector.load %arg11[%c0_5, %c0_6] : memref<64x384xf32, #tpu.memory_space<vmem>>, vector<64x384xf32>
    tpu.vector_store %arg11[%c0_5, %c0_6], %5 {strides = array<i32>} : memref<64x384xf32, #tpu.memory_space<vmem>>, vector<64x384xf32>,
    %c0_7 = arith.constant 0 : index
    %c0_8 = arith.constant 0 : index
    %7 = vector.load %arg3[%c0_7, %c0_8] : memref<128x384xf32, #tpu.memory_space<vmem>>, vector<128x384xf32>
    %c0_9 = arith.constant 0 : index
    %c0_10 = arith.constant 0 : index
    %8 = vector.load %arg5[%c0_9, %c0_10] : memref<1x128xf32, #tpu.memory_space<vmem>>, vector<1x128xf32>
    %cst_11 = arith.constant 0.000000e+00 : f32
    %9 = vector.broadcast %cst_11 : f32 to vector<8x128xf32>
    %c0_i32 = arith.constant 0 : i32
    %c8_i32 = arith.constant 8 : i32
    %10 = arith.muli %c0_i32, %c8_i32 : i32
    %11 = tpu.assume_multiple %10, 8 : i32
    %12 = arith.index_cast %11 : i32 to index
    %c0_12 = arith.constant 0 : index
    %13 = vector.load %arg11[%12, %c0_12] : memref<64x384xf32, #tpu.memory_space<vmem>>, vector<8x384xf32>
    %cst_13 = arith.constant dense<0.000000e+00> : vector<8x384xf32>
    %14 = tpu.matmul %9, %7, %cst_13 {dimension_numbers = #tpu.dot_dimension_numbers<[1], [0], [0], [1], [0, 0, 1, 1], [], []>} : vector<8x128xf32>, vector<128x384xf32>, vector<8x384xf32> -> vector<8x384xf32>
    %15 = vector.extract_strided_slice %13 {offsets = [0, 0], sizes = [8, 128], strides = [1, 1]} : vector<8x384xf32> to vector<8x128xf32>
    %16 = vector.extract_strided_slice %14 {offsets = [0, 0], sizes = [8, 128], strides = [1, 1]} : vector<8x384xf32> to vector<8x128xf32>
    %17 = arith.addf %15, %16 : vector<8x128xf32>
    %cst_14 = arith.constant 5.000000e-01 : f32
    %18 = vector.broadcast %cst_14 : f32 to vector<8x128xf32>
    %19 = arith.mulf %18, %17 : vector<8x128xf32>
    %20 = math.tanh %19 : vector<8x128xf32>
    %cst_15 = arith.constant 5.000000e-01 : f32
    %21 = vector.broadcast %cst_15 : f32 to vector<8x128xf32>
    %22 = arith.mulf %21, %20 : vector<8x128xf32>
    %cst_16 = arith.constant 5.000000e-01 : f32
    %23 = vector.broadcast %cst_16 : f32 to vector<8x128xf32>
    %24 = arith.addf %23, %22 : vector<8x128xf32>
    %25 = vector.extract_strided_slice %13 {offsets = [0, 128], sizes = [8, 128], strides = [1, 1]} : vector<8x384xf32> to vector<8x128xf32>
    %26 = vector.extract_strided_slice %14 {offsets = [0, 128], sizes = [8, 128], strides = [1, 1]} : vector<8x384xf32> to vector<8x128xf32>
    %27 = arith.addf %25, %26 : vector<8x128xf32>
    %cst_17 = arith.constant 5.000000e-01 : f32
    %28 = vector.broadcast %cst_17 : f32 to vector<8x128xf32>
    %29 = arith.mulf %28, %27 : vector<8x128xf32>
    %30 = math.tanh %29 : vector<8x128xf32>
    %cst_18 = arith.constant 5.000000e-01 : f32
    %31 = vector.broadcast %cst_18 : f32 to vector<8x128xf32>
    %32 = arith.mulf %31, %30 : vector<8x128xf32>
    %cst_19 = arith.constant 5.000000e-01 : f32
    %33 = vector.broadcast %cst_19 : f32 to vector<8x128xf32>
    %34 = arith.addf %33, %32 : vector<8x128xf32>
    %35 = vector.extract_strided_slice %13 {offsets = [0, 256], sizes = [8, 128], strides = [1, 1]} : vector<8x384xf32> to vector<8x128xf32>
    %36 = vector.extract_strided_slice %14 {offsets = [0, 256], sizes = [8, 128], strides = [1, 1]} : vector<8x384xf32> to vector<8x128xf32>
    %37 = vector.broadcast %8 : vector<1x128xf32> to vector<8x128xf32>
    %38 = arith.addf %36, %37 : vector<8x128xf32>
    %39 = arith.mulf %24, %38 : vector<8x128xf32>
    %40 = arith.addf %35, %39 : vector<8x128xf32>
    %41 = math.tanh %40 : vector<8x128xf32>
    %cst_20 = arith.constant 1.000000e+00 : f32
    %42 = vector.broadcast %cst_20 : f32 to vector<8x128xf32>
    %43 = arith.subf %42, %34 : vector<8x128xf32>
    %44 = arith.mulf %43, %41 : vector<8x128xf32>
    %45 = arith.mulf %34, %9 : vector<8x128xf32>
    %46 = arith.addf %44, %45 : vector<8x128xf32>
    %c1_i32 = arith.constant 1 : i32
    %c8_i32_21 = arith.constant 8 : i32
    %47 = arith.muli %c1_i32, %c8_i32_21 : i32
    %48 = tpu.assume_multiple %47, 8 : i32
    %49 = arith.index_cast %48 : i32 to index
    %c0_22 = arith.constant 0 : index
    %50 = vector.load %arg11[%49, %c0_22] : memref<64x384xf32, #tpu.memory_space<vmem>>, vector<8x384xf32>
    %cst_23 = arith.constant dense<0.000000e+00> : vector<8x384xf32>
    %51 = tpu.matmul %46, %7, %cst_23 {dimension_numbers = #tpu.dot_dimension_numbers<[1], [0], [0], [1], [0, 0, 1, 1], [], []>} : vector<8x128xf32>, vector<128x384xf32>, vector<8x384xf32> -> vector<8x384xf32>
    %52 = vector.extract_strided_slice %50 {offsets = [0, 0], sizes = [8, 128], strides = [1, 1]} : vector<8x384xf32> to vector<8x128xf32>
    %53 = vector.extract_strided_slice %51 {offsets = [0, 0], sizes = [8, 128], strides = [1, 1]} : vector<8x384xf32> to vector<8x128xf32>
    %54 = arith.addf %52, %53 : vector<8x128xf32>
    %cst_24 = arith.constant 5.000000e-01 : f32
    %55 = vector.broadcast %cst_24 : f32 to vector<8x128xf32>
    %56 = arith.mulf %55, %54 : vector<8x128xf32>
    %57 = math.tanh %56 : vector<8x128xf32>
    %cst_25 = arith.constant 5.000000e-01 : f32
    %58 = vector.broadcast %cst_25 : f32 to vector<8x128xf32>
    %59 = arith.mulf %58, %57 : vector<8x128xf32>
    %cst_26 = arith.constant 5.000000e-01 : f32
    %60 = vector.broadcast %cst_26 : f32 to vector<8x128xf32>
    %61 = arith.addf %60, %59 : vector<8x128xf32>
    %62 = vector.extract_strided_slice %50 {offsets = [0, 128], sizes = [8, 128], strides = [1, 1]} : vector<8x384xf32> to vector<8x128xf32>
    %63 = vector.extract_strided_slice %51 {offsets = [0, 128], sizes = [8, 128], strides = [1, 1]} : vector<8x384xf32> to vector<8x128xf32>
    %64 = arith.addf %62, %63 : vector<8x128xf32>
    %cst_27 = arith.constant 5.000000e-01 : f32
    %65 = vector.broadcast %cst_27 : f32 to vector<8x128xf32>
    %66 = arith.mulf %65, %64 : vector<8x128xf32>
    %67 = math.tanh %66 : vector<8x128xf32>
    %cst_28 = arith.constant 5.000000e-01 : f32
    %68 = vector.broadcast %cst_28 : f32 to vector<8x128xf32>
    %69 = arith.mulf %68, %67 : vector<8x128xf32>
    %cst_29 = arith.constant 5.000000e-01 : f32
    %70 = vector.broadcast %cst_29 : f32 to vector<8x128xf32>
    %71 = arith.addf %70, %69 : vector<8x128xf32>
    %72 = vector.extract_strided_slice %50 {offsets = [0, 256], sizes = [8, 128], strides = [1, 1]} : vector<8x384xf32> to vector<8x128xf32>
    %73 = vector.extract_strided_slice %51 {offsets = [0, 256], sizes = [8, 128], strides = [1, 1]} : vector<8x384xf32> to vector<8x128xf32>
    %74 = vector.broadcast %8 : vector<1x128xf32> to vector<8x128xf32>
    %75 = arith.addf %73, %74 : vector<8x128xf32>
    %76 = arith.mulf %61, %75 : vector<8x128xf32>
    %77 = arith.addf %72, %76 : vector<8x128xf32>
    %78 = math.tanh %77 : vector<8x128xf32>
    %cst_30 = arith.constant 1.000000e+00 : f32
    %79 = vector.broadcast %cst_30 : f32 to vector<8x128xf32>
    %80 = arith.subf %79, %71 : vector<8x128xf32>
    %81 = arith.mulf %80, %78 : vector<8x128xf32>
    %82 = arith.mulf %71, %46 : vector<8x128xf32>
    %83 = arith.addf %81, %82 : vector<8x128xf32>
    %c2_i32 = arith.constant 2 : i32
    %c8_i32_31 = arith.constant 8 : i32
    %84 = arith.muli %c2_i32, %c8_i32_31 : i32
    %85 = tpu.assume_multiple %84, 8 : i32
    %86 = arith.index_cast %85 : i32 to index
    %c0_32 = arith.constant 0 : index
    %87 = vector.load %arg11[%86, %c0_32] : memref<64x384xf32, #tpu.memory_space<vmem>>, vector<8x384xf32>
    %cst_33 = arith.constant dense<0.000000e+00> : vector<8x384xf32>
    %88 = tpu.matmul %83, %7, %cst_33 {dimension_numbers = #tpu.dot_dimension_numbers<[1], [0], [0], [1], [0, 0, 1, 1], [], []>} : vector<8x128xf32>, vector<128x384xf32>, vector<8x384xf32> -> vector<8x384xf32>
    %89 = vector.extract_strided_slice %87 {offsets = [0, 0], sizes = [8, 128], strides = [1, 1]} : vector<8x384xf32> to vector<8x128xf32>
    %90 = vector.extract_strided_slice %88 {offsets = [0, 0], sizes = [8, 128], strides = [1, 1]} : vector<8x384xf32> to vector<8x128xf32>
    %91 = arith.addf %89, %90 : vector<8x128xf32>
    %cst_34 = arith.constant 5.000000e-01 : f32
    %92 = vector.broadcast %cst_34 : f32 to vector<8x128xf32>
    %93 = arith.mulf %92, %91 : vector<8x128xf32>
    %94 = math.tanh %93 : vector<8x128xf32>
    %cst_35 = arith.constant 5.000000e-01 : f32
    %95 = vector.broadcast %cst_35 : f32 to vector<8x128xf32>
    %96 = arith.mulf %95, %94 : vector<8x128xf32>
    %cst_36 = arith.constant 5.000000e-01 : f32
    %97 = vector.broadcast %cst_36 : f32 to vector<8x128xf32>
    %98 = arith.addf %97, %96 : vector<8x128xf32>
    %99 = vector.extract_strided_slice %87 {offsets = [0, 128], sizes = [8, 128], strides = [1, 1]} : vector<8x384xf32> to vector<8x128xf32>
    %100 = vector.extract_strided_slice %88 {offsets = [0, 128], sizes = [8, 128], strides = [1, 1]} : vector<8x384xf32> to vector<8x128xf32>
    %101 = arith.addf %99, %100 : vector<8x128xf32>
    %cst_37 = arith.constant 5.000000e-01 : f32
    %102 = vector.broadcast %cst_37 : f32 to vector<8x128xf32>
    %103 = arith.mulf %102, %101 : vector<8x128xf32>
    %104 = math.tanh %103 : vector<8x128xf32>
    %cst_38 = arith.constant 5.000000e-01 : f32
    %105 = vector.broadcast %cst_38 : f32 to vector<8x128xf32>
    %106 = arith.mulf %105, %104 : vector<8x128xf32>
    %cst_39 = arith.constant 5.000000e-01 : f32
    %107 = vector.broadcast %cst_39 : f32 to vector<8x128xf32>
    %108 = arith.addf %107, %106 : vector<8x128xf32>
    %109 = vector.extract_strided_slice %87 {offsets = [0, 256], sizes = [8, 128], strides = [1, 1]} : vector<8x384xf32> to vector<8x128xf32>
    %110 = vector.extract_strided_slice %88 {offsets = [0, 256], sizes = [8, 128], strides = [1, 1]} : vector<8x384xf32> to vector<8x128xf32>
    %111 = vector.broadcast %8 : vector<1x128xf32> to vector<8x128xf32>
    %112 = arith.addf %110, %111 : vector<8x128xf32>
    %113 = arith.mulf %98, %112 : vector<8x128xf32>
    %114 = arith.addf %109, %113 : vector<8x128xf32>
    %115 = math.tanh %114 : vector<8x128xf32>
    %cst_40 = arith.constant 1.000000e+00 : f32
    %116 = vector.broadcast %cst_40 : f32 to vector<8x128xf32>
    %117 = arith.subf %116, %108 : vector<8x128xf32>
    %118 = arith.mulf %117, %115 : vector<8x128xf32>
    %119 = arith.mulf %108, %83 : vector<8x128xf32>
    %120 = arith.addf %118, %119 : vector<8x128xf32>
    %c3_i32 = arith.constant 3 : i32
    %c8_i32_41 = arith.constant 8 : i32
    %121 = arith.muli %c3_i32, %c8_i32_41 : i32
    %122 = tpu.assume_multiple %121, 8 : i32
    %123 = arith.index_cast %122 : i32 to index
    %c0_42 = arith.constant 0 : index
    %124 = vector.load %arg11[%123, %c0_42] : memref<64x384xf32, #tpu.memory_space<vmem>>, vector<8x384xf32>
    %cst_43 = arith.constant dense<0.000000e+00> : vector<8x384xf32>
    %125 = tpu.matmul %120, %7, %cst_43 {dimension_numbers = #tpu.dot_dimension_numbers<[1], [0], [0], [1], [0, 0, 1, 1], [], []>} : vector<8x128xf32>, vector<128x384xf32>, vector<8x384xf32> -> vector<8x384xf32>
    %126 = vector.extract_strided_slice %124 {offsets = [0, 0], sizes = [8, 128], strides = [1, 1]} : vector<8x384xf32> to vector<8x128xf32>
    %127 = vector.extract_strided_slice %125 {offsets = [0, 0], sizes = [8, 128], strides = [1, 1]} : vector<8x384xf32> to vector<8x128xf32>
    %128 = arith.addf %126, %127 : vector<8x128xf32>
    %cst_44 = arith.constant 5.000000e-01 : f32
    %129 = vector.broadcast %cst_44 : f32 to vector<8x128xf32>
    %130 = arith.mulf %129, %128 : vector<8x128xf32>
    %131 = math.tanh %130 : vector<8x128xf32>
    %cst_45 = arith.constant 5.000000e-01 : f32
    %132 = vector.broadcast %cst_45 : f32 to vector<8x128xf32>
    %133 = arith.mulf %132, %131 : vector<8x128xf32>
    %cst_46 = arith.constant 5.000000e-01 : f32
    %134 = vector.broadcast %cst_46 : f32 to vector<8x128xf32>
    %135 = arith.addf %134, %133 : vector<8x128xf32>
    %136 = vector.extract_strided_slice %124 {offsets = [0, 128], sizes = [8, 128], strides = [1, 1]} : vector<8x384xf32> to vector<8x128xf32>
    %137 = vector.extract_strided_slice %125 {offsets = [0, 128], sizes = [8, 128], strides = [1, 1]} : vector<8x384xf32> to vector<8x128xf32>
    %138 = arith.addf %136, %137 : vector<8x128xf32>
    %cst_47 = arith.constant 5.000000e-01 : f32
    %139 = vector.broadcast %cst_47 : f32 to vector<8x128xf32>
    %140 = arith.mulf %139, %138 : vector<8x128xf32>
    %141 = math.tanh %140 : vector<8x128xf32>
    %cst_48 = arith.constant 5.000000e-01 : f32
    %142 = vector.broadcast %cst_48 : f32 to vector<8x128xf32>
    %143 = arith.mulf %142, %141 : vector<8x128xf32>
    %cst_49 = arith.constant 5.000000e-01 : f32
    %144 = vector.broadcast %cst_49 : f32 to vector<8x128xf32>
    %145 = arith.addf %144, %143 : vector<8x128xf32>
    %146 = vector.extract_strided_slice %124 {offsets = [0, 256], sizes = [8, 128], strides = [1, 1]} : vector<8x384xf32> to vector<8x128xf32>
    %147 = vector.extract_strided_slice %125 {offsets = [0, 256], sizes = [8, 128], strides = [1, 1]} : vector<8x384xf32> to vector<8x128xf32>
    %148 = vector.broadcast %8 : vector<1x128xf32> to vector<8x128xf32>
    %149 = arith.addf %147, %148 : vector<8x128xf32>
    %150 = arith.mulf %135, %149 : vector<8x128xf32>
    %151 = arith.addf %146, %150 : vector<8x128xf32>
    %152 = math.tanh %151 : vector<8x128xf32>
    %cst_50 = arith.constant 1.000000e+00 : f32
    %153 = vector.broadcast %cst_50 : f32 to vector<8x128xf32>
    %154 = arith.subf %153, %145 : vector<8x128xf32>
    %155 = arith.mulf %154, %152 : vector<8x128xf32>
    %156 = arith.mulf %145, %120 : vector<8x128xf32>
    %157 = arith.addf %155, %156 : vector<8x128xf32>
    %c4_i32 = arith.constant 4 : i32
    %c8_i32_51 = arith.constant 8 : i32
    %158 = arith.muli %c4_i32, %c8_i32_51 : i32
    %159 = tpu.assume_multiple %158, 8 : i32
    %160 = arith.index_cast %159 : i32 to index
    %c0_52 = arith.constant 0 : index
    %161 = vector.load %arg11[%160, %c0_52] : memref<64x384xf32, #tpu.memory_space<vmem>>, vector<8x384xf32>
    %cst_53 = arith.constant dense<0.000000e+00> : vector<8x384xf32>
    %162 = tpu.matmul %157, %7, %cst_53 {dimension_numbers = #tpu.dot_dimension_numbers<[1], [0], [0], [1], [0, 0, 1, 1], [], []>} : vector<8x128xf32>, vector<128x384xf32>, vector<8x384xf32> -> vector<8x384xf32>
    %163 = vector.extract_strided_slice %161 {offsets = [0, 0], sizes = [8, 128], strides = [1, 1]} : vector<8x384xf32> to vector<8x128xf32>
    %164 = vector.extract_strided_slice %162 {offsets = [0, 0], sizes = [8, 128], strides = [1, 1]} : vector<8x384xf32> to vector<8x128xf32>
    %165 = arith.addf %163, %164 : vector<8x128xf32>
    %cst_54 = arith.constant 5.000000e-01 : f32
    %166 = vector.broadcast %cst_54 : f32 to vector<8x128xf32>
    %167 = arith.mulf %166, %165 : vector<8x128xf32>
    %168 = math.tanh %167 : vector<8x128xf32>
    %cst_55 = arith.constant 5.000000e-01 : f32
    %169 = vector.broadcast %cst_55 : f32 to vector<8x128xf32>
    %170 = arith.mulf %169, %168 : vector<8x128xf32>
    %cst_56 = arith.constant 5.000000e-01 : f32
    %171 = vector.broadcast %cst_56 : f32 to vector<8x128xf32>
    %172 = arith.addf %171, %170 : vector<8x128xf32>
    %173 = vector.extract_strided_slice %161 {offsets = [0, 128], sizes = [8, 128], strides = [1, 1]} : vector<8x384xf32> to vector<8x128xf32>
    %174 = vector.extract_strided_slice %162 {offsets = [0, 128], sizes = [8, 128], strides = [1, 1]} : vector<8x384xf32> to vector<8x128xf32>
    %175 = arith.addf %173, %174 : vector<8x128xf32>
    %cst_57 = arith.constant 5.000000e-01 : f32
    %176 = vector.broadcast %cst_57 : f32 to vector<8x128xf32>
    %177 = arith.mulf %176, %175 : vector<8x128xf32>
    %178 = math.tanh %177 : vector<8x128xf32>
    %cst_58 = arith.constant 5.000000e-01 : f32
    %179 = vector.broadcast %cst_58 : f32 to vector<8x128xf32>
    %180 = arith.mulf %179, %178 : vector<8x128xf32>
    %cst_59 = arith.constant 5.000000e-01 : f32
    %181 = vector.broadcast %cst_59 : f32 to vector<8x128xf32>
    %182 = arith.addf %181, %180 : vector<8x128xf32>
    %183 = vector.extract_strided_slice %161 {offsets = [0, 256], sizes = [8, 128], strides = [1, 1]} : vector<8x384xf32> to vector<8x128xf32>
    %184 = vector.extract_strided_slice %162 {offsets = [0, 256], sizes = [8, 128], strides = [1, 1]} : vector<8x384xf32> to vector<8x128xf32>
    %185 = vector.broadcast %8 : vector<1x128xf32> to vector<8x128xf32>
    %186 = arith.addf %184, %185 : vector<8x128xf32>
    %187 = arith.mulf %172, %186 : vector<8x128xf32>
    %188 = arith.addf %183, %187 : vector<8x128xf32>
    %189 = math.tanh %188 : vector<8x128xf32>
    %cst_60 = arith.constant 1.000000e+00 : f32
    %190 = vector.broadcast %cst_60 : f32 to vector<8x128xf32>
    %191 = arith.subf %190, %182 : vector<8x128xf32>
    %192 = arith.mulf %191, %189 : vector<8x128xf32>
    %193 = arith.mulf %182, %157 : vector<8x128xf32>
    %194 = arith.addf %192, %193 : vector<8x128xf32>
    %c5_i32 = arith.constant 5 : i32
    %c8_i32_61 = arith.constant 8 : i32
    %195 = arith.muli %c5_i32, %c8_i32_61 : i32
    %196 = tpu.assume_multiple %195, 8 : i32
    %197 = arith.index_cast %196 : i32 to index
    %c0_62 = arith.constant 0 : index
    %198 = vector.load %arg11[%197, %c0_62] : memref<64x384xf32, #tpu.memory_space<vmem>>, vector<8x384xf32>
    %cst_63 = arith.constant dense<0.000000e+00> : vector<8x384xf32>
    %199 = tpu.matmul %194, %7, %cst_63 {dimension_numbers = #tpu.dot_dimension_numbers<[1], [0], [0], [1], [0, 0, 1, 1], [], []>} : vector<8x128xf32>, vector<128x384xf32>, vector<8x384xf32> -> vector<8x384xf32>
    %200 = vector.extract_strided_slice %198 {offsets = [0, 0], sizes = [8, 128], strides = [1, 1]} : vector<8x384xf32> to vector<8x128xf32>
    %201 = vector.extract_strided_slice %199 {offsets = [0, 0], sizes = [8, 128], strides = [1, 1]} : vector<8x384xf32> to vector<8x128xf32>
    %202 = arith.addf %200, %201 : vector<8x128xf32>
    %cst_64 = arith.constant 5.000000e-01 : f32
    %203 = vector.broadcast %cst_64 : f32 to vector<8x128xf32>
    %204 = arith.mulf %203, %202 : vector<8x128xf32>
    %205 = math.tanh %204 : vector<8x128xf32>
    %cst_65 = arith.constant 5.000000e-01 : f32
    %206 = vector.broadcast %cst_65 : f32 to vector<8x128xf32>
    %207 = arith.mulf %206, %205 : vector<8x128xf32>
    %cst_66 = arith.constant 5.000000e-01 : f32
    %208 = vector.broadcast %cst_66 : f32 to vector<8x128xf32>
    %209 = arith.addf %208, %207 : vector<8x128xf32>
    %210 = vector.extract_strided_slice %198 {offsets = [0, 128], sizes = [8, 128], strides = [1, 1]} : vector<8x384xf32> to vector<8x128xf32>
    %211 = vector.extract_strided_slice %199 {offsets = [0, 128], sizes = [8, 128], strides = [1, 1]} : vector<8x384xf32> to vector<8x128xf32>
    %212 = arith.addf %210, %211 : vector<8x128xf32>
    %cst_67 = arith.constant 5.000000e-01 : f32
    %213 = vector.broadcast %cst_67 : f32 to vector<8x128xf32>
    %214 = arith.mulf %213, %212 : vector<8x128xf32>
    %215 = math.tanh %214 : vector<8x128xf32>
    %cst_68 = arith.constant 5.000000e-01 : f32
    %216 = vector.broadcast %cst_68 : f32 to vector<8x128xf32>
    %217 = arith.mulf %216, %215 : vector<8x128xf32>
    %cst_69 = arith.constant 5.000000e-01 : f32
    %218 = vector.broadcast %cst_69 : f32 to vector<8x128xf32>
    %219 = arith.addf %218, %217 : vector<8x128xf32>
    %220 = vector.extract_strided_slice %198 {offsets = [0, 256], sizes = [8, 128], strides = [1, 1]} : vector<8x384xf32> to vector<8x128xf32>
    %221 = vector.extract_strided_slice %199 {offsets = [0, 256], sizes = [8, 128], strides = [1, 1]} : vector<8x384xf32> to vector<8x128xf32>
    %222 = vector.broadcast %8 : vector<1x128xf32> to vector<8x128xf32>
    %223 = arith.addf %221, %222 : vector<8x128xf32>
    %224 = arith.mulf %209, %223 : vector<8x128xf32>
    %225 = arith.addf %220, %224 : vector<8x128xf32>
    %226 = math.tanh %225 : vector<8x128xf32>
    %cst_70 = arith.constant 1.000000e+00 : f32
    %227 = vector.broadcast %cst_70 : f32 to vector<8x128xf32>
    %228 = arith.subf %227, %219 : vector<8x128xf32>
    %229 = arith.mulf %228, %226 : vector<8x128xf32>
    %230 = arith.mulf %219, %194 : vector<8x128xf32>
    %231 = arith.addf %229, %230 : vector<8x128xf32>
    %c6_i32 = arith.constant 6 : i32
    %c8_i32_71 = arith.constant 8 : i32
    %232 = arith.muli %c6_i32, %c8_i32_71 : i32
    %233 = tpu.assume_multiple %232, 8 : i32
    %234 = arith.index_cast %233 : i32 to index
    %c0_72 = arith.constant 0 : index
    %235 = vector.load %arg11[%234, %c0_72] : memref<64x384xf32, #tpu.memory_space<vmem>>, vector<8x384xf32>
    %cst_73 = arith.constant dense<0.000000e+00> : vector<8x384xf32>
    %236 = tpu.matmul %231, %7, %cst_73 {dimension_numbers = #tpu.dot_dimension_numbers<[1], [0], [0], [1], [0, 0, 1, 1], [], []>} : vector<8x128xf32>, vector<128x384xf32>, vector<8x384xf32> -> vector<8x384xf32>
    %237 = vector.extract_strided_slice %235 {offsets = [0, 0], sizes = [8, 128], strides = [1, 1]} : vector<8x384xf32> to vector<8x128xf32>
    %238 = vector.extract_strided_slice %236 {offsets = [0, 0], sizes = [8, 128], strides = [1, 1]} : vector<8x384xf32> to vector<8x128xf32>
    %239 = arith.addf %237, %238 : vector<8x128xf32>
    %cst_74 = arith.constant 5.000000e-01 : f32
    %240 = vector.broadcast %cst_74 : f32 to vector<8x128xf32>
    %241 = arith.mulf %240, %239 : vector<8x128xf32>
    %242 = math.tanh %241 : vector<8x128xf32>
    %cst_75 = arith.constant 5.000000e-01 : f32
    %243 = vector.broadcast %cst_75 : f32 to vector<8x128xf32>
    %244 = arith.mulf %243, %242 : vector<8x128xf32>
    %cst_76 = arith.constant 5.000000e-01 : f32
    %245 = vector.broadcast %cst_76 : f32 to vector<8x128xf32>
    %246 = arith.addf %245, %244 : vector<8x128xf32>
    %247 = vector.extract_strided_slice %235 {offsets = [0, 128], sizes = [8, 128], strides = [1, 1]} : vector<8x384xf32> to vector<8x128xf32>
    %248 = vector.extract_strided_slice %236 {offsets = [0, 128], sizes = [8, 128], strides = [1, 1]} : vector<8x384xf32> to vector<8x128xf32>
    %249 = arith.addf %247, %248 : vector<8x128xf32>
    %cst_77 = arith.constant 5.000000e-01 : f32
    %250 = vector.broadcast %cst_77 : f32 to vector<8x128xf32>
    %251 = arith.mulf %250, %249 : vector<8x128xf32>
    %252 = math.tanh %251 : vector<8x128xf32>
    %cst_78 = arith.constant 5.000000e-01 : f32
    %253 = vector.broadcast %cst_78 : f32 to vector<8x128xf32>
    %254 = arith.mulf %253, %252 : vector<8x128xf32>
    %cst_79 = arith.constant 5.000000e-01 : f32
    %255 = vector.broadcast %cst_79 : f32 to vector<8x128xf32>
    %256 = arith.addf %255, %254 : vector<8x128xf32>
    %257 = vector.extract_strided_slice %235 {offsets = [0, 256], sizes = [8, 128], strides = [1, 1]} : vector<8x384xf32> to vector<8x128xf32>
    %258 = vector.extract_strided_slice %236 {offsets = [0, 256], sizes = [8, 128], strides = [1, 1]} : vector<8x384xf32> to vector<8x128xf32>
    %259 = vector.broadcast %8 : vector<1x128xf32> to vector<8x128xf32>
    %260 = arith.addf %258, %259 : vector<8x128xf32>
    %261 = arith.mulf %246, %260 : vector<8x128xf32>
    %262 = arith.addf %257, %261 : vector<8x128xf32>
    %263 = math.tanh %262 : vector<8x128xf32>
    %cst_80 = arith.constant 1.000000e+00 : f32
    %264 = vector.broadcast %cst_80 : f32 to vector<8x128xf32>
    %265 = arith.subf %264, %256 : vector<8x128xf32>
    %266 = arith.mulf %265, %263 : vector<8x128xf32>
    %267 = arith.mulf %256, %231 : vector<8x128xf32>
    %268 = arith.addf %266, %267 : vector<8x128xf32>
    %c7_i32 = arith.constant 7 : i32
    %c8_i32_81 = arith.constant 8 : i32
    %269 = arith.muli %c7_i32, %c8_i32_81 : i32
    %270 = tpu.assume_multiple %269, 8 : i32
    %271 = arith.index_cast %270 : i32 to index
    %c0_82 = arith.constant 0 : index
    %272 = vector.load %arg11[%271, %c0_82] : memref<64x384xf32, #tpu.memory_space<vmem>>, vector<8x384xf32>
    %cst_83 = arith.constant dense<0.000000e+00> : vector<8x384xf32>
    %273 = tpu.matmul %268, %7, %cst_83 {dimension_numbers = #tpu.dot_dimension_numbers<[1], [0], [0], [1], [0, 0, 1, 1], [], []>} : vector<8x128xf32>, vector<128x384xf32>, vector<8x384xf32> -> vector<8x384xf32>
    %274 = vector.extract_strided_slice %272 {offsets = [0, 0], sizes = [8, 128], strides = [1, 1]} : vector<8x384xf32> to vector<8x128xf32>
    %275 = vector.extract_strided_slice %273 {offsets = [0, 0], sizes = [8, 128], strides = [1, 1]} : vector<8x384xf32> to vector<8x128xf32>
    %276 = arith.addf %274, %275 : vector<8x128xf32>
    %cst_84 = arith.constant 5.000000e-01 : f32
    %277 = vector.broadcast %cst_84 : f32 to vector<8x128xf32>
    %278 = arith.mulf %277, %276 : vector<8x128xf32>
    %279 = math.tanh %278 : vector<8x128xf32>
    %cst_85 = arith.constant 5.000000e-01 : f32
    %280 = vector.broadcast %cst_85 : f32 to vector<8x128xf32>
    %281 = arith.mulf %280, %279 : vector<8x128xf32>
    %cst_86 = arith.constant 5.000000e-01 : f32
    %282 = vector.broadcast %cst_86 : f32 to vector<8x128xf32>
    %283 = arith.addf %282, %281 : vector<8x128xf32>
    %284 = vector.extract_strided_slice %272 {offsets = [0, 128], sizes = [8, 128], strides = [1, 1]} : vector<8x384xf32> to vector<8x128xf32>
    %285 = vector.extract_strided_slice %273 {offsets = [0, 128], sizes = [8, 128], strides = [1, 1]} : vector<8x384xf32> to vector<8x128xf32>
    %286 = arith.addf %284, %285 : vector<8x128xf32>
    %cst_87 = arith.constant 5.000000e-01 : f32
    %287 = vector.broadcast %cst_87 : f32 to vector<8x128xf32>
    %288 = arith.mulf %287, %286 : vector<8x128xf32>
    %289 = math.tanh %288 : vector<8x128xf32>
    %cst_88 = arith.constant 5.000000e-01 : f32
    %290 = vector.broadcast %cst_88 : f32 to vector<8x128xf32>
    %291 = arith.mulf %290, %289 : vector<8x128xf32>
    %cst_89 = arith.constant 5.000000e-01 : f32
    %292 = vector.broadcast %cst_89 : f32 to vector<8x128xf32>
    %293 = arith.addf %292, %291 : vector<8x128xf32>
    %294 = vector.extract_strided_slice %272 {offsets = [0, 256], sizes = [8, 128], strides = [1, 1]} : vector<8x384xf32> to vector<8x128xf32>
    %295 = vector.extract_strided_slice %273 {offsets = [0, 256], sizes = [8, 128], strides = [1, 1]} : vector<8x384xf32> to vector<8x128xf32>
    %296 = vector.broadcast %8 : vector<1x128xf32> to vector<8x128xf32>
    %297 = arith.addf %295, %296 : vector<8x128xf32>
    %298 = arith.mulf %283, %297 : vector<8x128xf32>
    %299 = arith.addf %294, %298 : vector<8x128xf32>
    %300 = math.tanh %299 : vector<8x128xf32>
    %cst_90 = arith.constant 1.000000e+00 : f32
    %301 = vector.broadcast %cst_90 : f32 to vector<8x128xf32>
    %302 = arith.subf %301, %293 : vector<8x128xf32>
    %303 = arith.mulf %302, %300 : vector<8x128xf32>
    %304 = arith.mulf %293, %268 : vector<8x128xf32>
    %305 = arith.addf %303, %304 : vector<8x128xf32>
    %c8_i32_91 = arith.constant 8 : i32
    %c0_92 = arith.constant 0 : index
    %c0_93 = arith.constant 0 : index
    %306 = vector.load %arg6[%c0_92, %c0_93] : memref<128x128xf32, #tpu.memory_space<vmem>>, vector<128x128xf32>
    %cst_94 = arith.constant dense<0.000000e+00> : vector<8x128xf32>
    %307 = tpu.matmul %305, %306, %cst_94 {dimension_numbers = #tpu.dot_dimension_numbers<[1], [0], [0], [1], [0, 0, 1, 1], [], []>} : vector<8x128xf32>, vector<128x128xf32>, vector<8x128xf32> -> vector<8x128xf32>
    %c0_95 = arith.constant 0 : index
    %c0_96 = arith.constant 0 : index
    %308 = vector.load %arg7[%c0_95, %c0_96] : memref<1x128xf32, #tpu.memory_space<vmem>>, vector<1x128xf32>
    %309 = vector.broadcast %308 : vector<1x128xf32> to vector<8x128xf32>
    %310 = arith.addf %307, %309 : vector<8x128xf32>
    %311 = math.tanh %310 : vector<8x128xf32>
    %c0_97 = arith.constant 0 : index
    %c0_98 = arith.constant 0 : index
    %312 = vector.load %arg8[%c0_97, %c0_98] : memref<128x128xf32, #tpu.memory_space<vmem>>, vector<128x128xf32>
    %cst_99 = arith.constant dense<0.000000e+00> : vector<8x128xf32>
    %313 = tpu.matmul %311, %312, %cst_99 {dimension_numbers = #tpu.dot_dimension_numbers<[1], [0], [0], [1], [0, 0, 1, 1], [], []>} : vector<8x128xf32>, vector<128x128xf32>, vector<8x128xf32> -> vector<8x128xf32>
    %c0_100 = arith.constant 0 : index
    %c0_101 = arith.constant 0 : index
    %314 = vector.load %arg9[%c0_100, %c0_101] : memref<1x128xf32, #tpu.memory_space<vmem>>, vector<1x128xf32>
    %315 = vector.broadcast %314 : vector<1x128xf32> to vector<8x128xf32>
    %316 = arith.addf %313, %315 : vector<8x128xf32>
    %c0_102 = arith.constant 0 : index
    %c0_103 = arith.constant 0 : index
    %317 = vector.load %arg10[%c0_102, %c0_103] : memref<8x128xf32, #tpu.memory_space<vmem>>, vector<8x128xf32>
    tpu.vector_store %arg10[%c0_102, %c0_103], %316 {strides = array<i32>} : memref<8x128xf32, #tpu.memory_space<vmem>>, vector<8x128xf32>,
    return
  }
  func.func @transform_0(%arg0: i32) -> (i32, i32) {
    %c0_i32 = arith.constant 0 : i32
    %c0_i32_0 = arith.constant 0 : i32
    %c0_i32_1 = arith.constant 0 : i32
    return %c0_i32, %c0_i32_0 : i32, i32
  }
  func.func @transform_1(%arg0: i32) -> (i32, i32) {
    %c0_i32 = arith.constant 0 : i32
    %c0_i32_0 = arith.constant 0 : i32
    %c0_i32_1 = arith.constant 0 : i32
    return %c0_i32, %c0_i32_0 : i32, i32
  }
  func.func @transform_2(%arg0: i32) -> (i32, i32) {
    %c0_i32 = arith.constant 0 : i32
    %c0_i32_0 = arith.constant 0 : i32
    %c0_i32_1 = arith.constant 0 : i32
    return %c0_i32, %c0_i32_0 : i32, i32
  }
  func.func @transform_3(%arg0: i32) -> (i32, i32) {
    %c0_i32 = arith.constant 0 : i32
    %c0_i32_0 = arith.constant 0 : i32
    %c0_i32_1 = arith.constant 0 : i32
    return %c0_i32, %c0_i32_0 : i32, i32
  }
  func.func @transform_4(%arg0: i32) -> (i32, i32) {
    %c0_i32 = arith.constant 0 : i32
    %c0_i32_0 = arith.constant 0 : i32
    %c0_i32_1 = arith.constant 0 : i32
    return %c0_i32, %c0_i32_0 : i32, i32
  }
  func.func @transform_5(%arg0: i32) -> (i32, i32) {
    %c0_i32 = arith.constant 0 : i32
    %c0_i32_0 = arith.constant 0 : i32
    %c0_i32_1 = arith.constant 0 : i32
    return %c0_i32, %c0_i32_0 : i32, i32
  }
  func.func @transform_6(%arg0: i32) -> (i32, i32) {
    %c0_i32 = arith.constant 0 : i32
    %c0_i32_0 = arith.constant 0 : i32
    %c0_i32_1 = arith.constant 0 : i32
    return %c0_i32, %c0_i32_0 : i32, i32
  }
  func.func @transform_7(%arg0: i32) -> (i32, i32) {
    %c0_i32 = arith.constant 0 : i32
    %c0_i32_0 = arith.constant 0 : i32
    %c0_i32_1 = arith.constant 0 : i32
    return %c0_i32, %c0_i32_0 : i32, i32
  }
  func.func @transform_8(%arg0: i32) -> (i32, i32) {
    %c0_i32 = arith.constant 0 : i32
    %c0_i32_0 = arith.constant 0 : i32
    %c0_i32_1 = arith.constant 0 : i32
    return %c0_i32, %c0_i32_0 : i32, i32
  }
  func.func @transform_9(%arg0: i32) -> (i32, i32) {
    %c0_i32 = arith.constant 0 : i32
    %c0_i32_0 = arith.constant 0 : i32
    %c0_i32_1 = arith.constant 0 : i32
    return %c0_i32, %c0_i32_0 : i32, i32
  }
}

</mosaic_0001>

<bundles_post_ra>
// kernel: encoder_z0_forward.1
= control target key start
LH: loop header
LB: loop body
LE: loop exit
PB: predicated region body
PF: predicated region fallthrough
CT: control target
= control target key end

     0   :  { %14 = vsyncpa [#allocation4], 0  ;;  %s2217_s0 = inlined_call_operand.vmem [shape: f32[64,128], index: 0, kind: input, shape index: {}]   ;;  %s2218_s1 = inlined_call_operand.vmem [shape: f32[128,384], index: 1, kind: input, shape index: {}]   ;;  %s2219_s2 = inlined_call_operand.hbm [shape: f32[128,384], index: 2, kind: input, shape index: {}]   ;;  %s2220_s3 = inlined_call_operand.vmem [shape: f32[1,384], index: 3, kind: input, shape index: {}]   ;;  %s2221_s4 = inlined_call_operand.vmem [shape: f32[1,128], index: 4, kind: input, shape index: {}]   ;;  %s2222_s5 = inlined_call_operand.hbm [shape: f32[128,128], index: 5, kind: input, shape index: {}]   ;;  %s2223_s6 = inlined_call_operand.vmem [shape: f32[1,128], index: 6, kind: input, shape index: {}]   ;;  %s2224_s7 = inlined_call_operand.hbm [shape: f32[128,128], index: 7, kind: input, shape index: {}]   ;;  %s2225_s8 = inlined_call_operand.vmem [shape: f32[1,128], index: 8, kind: input, shape index: {}]   ;;  %s2226_s9 = inlined_call_operand.vmem [shape: f32[8,128], index: 9, kind: output, shape index: {}]  }
   0x1   :  { %15 = vsyncpa [#allocation6], 0  ;;  %s41_s11 = sshll.u32 %s2222_s5, 4  ;;  %s1294_s12 = smov [#allocation5]   ;;  %s42_s11 = int_to_ptr.hbm [resolvable:$true] %s41_s11 }
   0x2   :  { %s43_s13 = sshll.u32 %s1294_s12, 4  ;;  %s24_s16 = sshll.u32 %s2219_s2, 4  ;;  %s44_s13 = int_to_ptr.vmem [resolvable:$true] %s43_s13  ;;  %s25_s16 = int_to_ptr.hbm [resolvable:$true] %s24_s16 }
   0x3   :  { %s1295_s17 = smov 128   ;;  %s1296_s18 = smov 8  }
   0x4   :  { %49 = dma.hbm_to_vmem [thread:$0]  %s42_s11, 2048, %s44_s13, [#allocation6], %s1295_s17, %s1295_s17, %s1296_s18  }
   0x5   :  { %s1297_s19 = smov [#allocation3]   ;;  %s1298_s21 = smov 384  }
   0x6   :  { %s26_s20 = sshll.u32 %s1297_s19, 4  ;;  %s1299_s22 = smov 24   ;;  %s27_s20 = int_to_ptr.vmem [resolvable:$true] %s26_s20 }
   0x7   :  { %32 = dma.hbm_to_vmem [thread:$0]  %s25_s16, 6144, %s27_s20, [#allocation4], %s1298_s21, %s1298_s21, %s1299_s22  }
   0x8   :  { %s56_s24 = sshll.u32 %s2224_s7, 4  ;;  %s1300_s25 = smov [#allocation7]   ;;  %s57_s24 = int_to_ptr.hbm [resolvable:$true] %s56_s24 }
   0x9   :  { %s58_s26 = sshll.u32 %s1300_s25, 4  ;;  %s59_s26 = int_to_ptr.vmem [resolvable:$true] %s58_s26 }
   0xa   :  { %64 = dma.hbm_to_vmem [thread:$0]  %s57_s24, 2048, %s59_s26, [#allocation6], %s1295_s17, %s1295_s17, %s1296_s18  }
   0xb   :  { %1290 = dma.done.wait [#allocation4], 6144  }
   0xc   :  { %1291 = vsyncadd [#allocation4], 4294961152 }
   0xd   :  { %1292 = dma.done.wait [#allocation6], 4096  }
   0xe   :  { %1293 = vsyncadd [#allocation6], 4294963200  ;;  %v132_v0 = vld [vmem:[%s2218_s1 + $0x168] sm:$0xff]  ;;  %v129_v2 = vld [vmem:[%s2218_s1 + $0x150] sm:$0xff]  ;;  %v1301_v41 = vmov 0.0  }
   0xf   :  { %v1364_v1 = vld [vmem:[#allocation3 + $0x168] sm:$0xff]  ;;  %143 = vmatpush.msra.mxu0 %v132_v0  ;;  %v1370_v3 = vld [vmem:[#allocation3 + $0x150] sm:$0xff]  ;;  %v126_v4 = vld [vmem:[%s2218_s1 + $0x138] sm:$0xff] }
  0x10   :  { %345 = vmatpush.msra.mxu3 %v1364_v1  ;;  %v1375_v5 = vld [vmem:[#allocation3 + $0x138] sm:$0xff]  ;;  %v123_v6 = vld [vmem:[%s2218_s1 + $0x120] sm:$0xff]  ;;  %v120_v8 = vld [vmem:[%s2218_s1 + $0x108] sm:$0xff] }
  0x11   :  { %144 = vmatpush.msra.mxu0 %v129_v2  ;;  %v1381_v7 = vld [vmem:[#allocation3 + $0x120] sm:$0xff]  ;;  %v1387_v9 = vld [vmem:[#allocation3 + $0x108] sm:$0xff]  ;;  %v117_v10 = vld [vmem:[%s2218_s1 + $0xf0] sm:$0xff] }
  0x12   :  { %346 = vmatpush.msra.mxu3 %v1370_v3  ;;  %v1393_v11 = vld [vmem:[#allocation3 + $0xf0] sm:$0xff]  ;;  %v114_v12 = vld [vmem:[%s2218_s1 + $0xd8] sm:$0xff]  ;;  %v111_v14 = vld [vmem:[%s2218_s1 + $0xc0] sm:$0xff] }
  0x13   :  { %145 = vmatpush.msra.mxu0 %v126_v4  ;;  %v1399_v13 = vld [vmem:[#allocation3 + $0xd8] sm:$0xff]  ;;  %v1405_v15 = vld [vmem:[#allocation3 + $0xc0] sm:$0xff]  ;;  %v108_v16 = vld [vmem:[%s2218_s1 + $0xa8] sm:$0xff] }
  0x14   :  { %347 = vmatpush.msra.mxu3 %v1375_v5  ;;  %v1411_v17 = vld [vmem:[#allocation3 + $0xa8] sm:$0xff]  ;;  %v105_v18 = vld [vmem:[%s2218_s1 + $0x90] sm:$0xff]  ;;  %v102_v20 = vld [vmem:[%s2218_s1 + $0x78] sm:$0xff] }
  0x15   :  { %146 = vmatpush.msra.mxu0 %v123_v6  ;;  %v1417_v19 = vld [vmem:[#allocation3 + $0x90] sm:$0xff]  ;;  %v1423_v21 = vld [vmem:[#allocation3 + $0x78] sm:$0xff]  ;;  %v99_v22 = vld [vmem:[%s2218_s1 + $0x60] sm:$0xff] }
  0x16   :  { %348 = vmatpush.msra.mxu3 %v1381_v7  ;;  %v1429_v23 = vld [vmem:[#allocation3 + $0x60] sm:$0xff]  ;;  %v96_v24 = vld [vmem:[%s2218_s1 + $0x48] sm:$0xff]  ;;  %v93_v26 = vld [vmem:[%s2218_s1 + $0x30] sm:$0xff] }
  0x17   :  { %147 = vmatpush.msra.mxu0 %v120_v8  ;;  %v1435_v25 = vld [vmem:[#allocation3 + $0x48] sm:$0xff]  ;;  %v1441_v27 = vld [vmem:[#allocation3 + $0x30] sm:$0xff]  ;;  %v130_v29 = vld [vmem:[%s2218_s1 + $0x158] sm:$0xff] }
  0x18   :  { %349 = vmatpush.msra.mxu3 %v1387_v9  ;;  %v133_v28 = vld [vmem:[%s2218_s1 + $0x170] sm:$0xff]  ;;  %v90_v30 = vld [vmem:[%s2218_s1 + $0x18] sm:$0xff]  ;;  %v127_v33 = vld [vmem:[%s2218_s1 + $0x140] sm:$0xff] }
  0x19   :  { %148 = vmatpush.msra.mxu0 %v117_v10  ;;  %v1453_v31 = vld [vmem:[#allocation3 + $0x18] sm:$0xff]  ;;  %184 = vmatpush.msra.mxu1 %v133_v28  ;;  %v131_v34 = vld [vmem:[%s2218_s1 + $0x160] sm:$0xff]  ;;  %v1478_v39 = vld [vmem:[#allocation3 + $0x170] sm:$0xff] }
  0x1a   :  { %350 = vmatpush.msra.mxu3 %v1393_v11  ;;  %2240 = vst [vmem:[#allocation10_spill] sm:$0xff] %v1453_v31  ;;  %v134_v32 = vld [vmem:[%s2218_s1 + $0x178] sm:$0xff]  ;;  %v87_v35 = vld [vmem:[%s2218_s1] sm:$0xff]  ;;  %v124_v43 = vld [vmem:[%s2218_s1 + $0x128] sm:$0xff] }
  0x1b   :  { %149 = vmatpush.msra.mxu0 %v114_v12  ;;  %v1468_v36 = vld [vmem:[#allocation3] sm:$0xff]  ;;  %185 = vmatpush.msra.mxu1 %v130_v29  ;;  %v1476_v38 = vld [vmem:[#allocation3 + $0x178] sm:$0xff]  ;;  %v128_v44 = vld [vmem:[%s2218_s1 + $0x148] sm:$0xff] }
  0x1c   :  { %351 = vmatpush.msra.mxu3 %v1399_v13  ;;  %2241 = vst [vmem:[#allocation11_spill] sm:$0xff] %v1468_v36  ;;  %225 = vmatpush.msra.mxu2 %v134_v32  ;;  %v1474_v37 = vld [vmem:[%s2217_s0] sm:$0xff]  ;;  %v1485_v42 = vld [vmem:[#allocation3 + $0x158] sm:$0xff]  ;;  %v121_v45 = vld [vmem:[%s2218_s1 + $0x110] sm:$0xff] }
  0x1d   :  { %150 = vmatpush.msra.mxu0 %v111_v14  ;;  %186 = vmatpush.msra.mxu1 %v127_v33  ;;  %v1481_v40 = vld [vmem:[#allocation3 + $0x160] sm:$0xff]  ;;  %v125_v46 = vld [vmem:[%s2218_s1 + $0x130] sm:$0xff]  ;;  %v1501_v47 = vld [vmem:[#allocation3 + $0x148] sm:$0xff] }
  0x1e   :  { %352 = vmatpush.msra.mxu3 %v1405_v15  ;;  %226 = vmatpush.msra.mxu2 %v131_v34  ;;  %v1503_v48 = vld [vmem:[#allocation3 + $0x140] sm:$0xff]  ;;  %v118_v49 = vld [vmem:[%s2218_s1 + $0xf8] sm:$0xff]  ;;  %v1513_v51 = vld [vmem:[#allocation3 + $0x130] sm:$0xff] }
  0x1f   :  { %151 = vmatpush.msra.mxu0 %v108_v16  ;;  %187 = vmatpush.msra.mxu1 %v124_v43  ;;  %v122_v50 = vld [vmem:[%s2218_s1 + $0x118] sm:$0xff]  ;;  %v1515_v52 = vld [vmem:[#allocation3 + $0x128] sm:$0xff]  ;;  %v115_v54 = vld [vmem:[%s2218_s1 + $0xe0] sm:$0xff] }
  0x20   :  { %353 = vmatpush.msra.mxu3 %v1411_v17  ;;  %227 = vmatpush.msra.mxu2 %v128_v44  ;;  %v1520_v53 = vld [vmem:[%s2217_s0 + $0x8] sm:$0xff]  ;;  %v1527_v55 = vld [vmem:[#allocation3 + $0x118] sm:$0xff]  ;;  %v1529_v56 = vld [vmem:[#allocation3 + $0x110] sm:$0xff] }
  0x21   :  { %152 = vmatpush.msra.mxu0 %v105_v18  ;;  %188 = vmatpush.msra.mxu1 %v121_v45  ;;  %v119_v57 = vld [vmem:[%s2218_s1 + $0x100] sm:$0xff]  ;;  %v1539_v59 = vld [vmem:[#allocation3 + $0xf8] sm:$0xff]  ;;  %v112_v60 = vld [vmem:[%s2218_s1 + $0xc8] sm:$0xff] }
  0x22   :  { %354 = vmatpush.msra.mxu3 %v1417_v19  ;;  %228 = vmatpush.msra.mxu2 %v125_v46  ;;  %v1537_v58 = vld [vmem:[#allocation3 + $0x100] sm:$0xff]  ;;  %v116_v61 = vld [vmem:[%s2218_s1 + $0xe8] sm:$0xff]  ;;  %v109_v62 = vld [vmem:[%s2218_s1 + $0xb0] sm:$0xff] }
  0x23   :  { %153 = vmatpush.msra.mxu0 %v102_v20  ;;  %189 = vmatpush.msra.mxu1 %v118_v49  ;;  %v1552_v63 = vld [vmem:[#allocation3 + $0xe8] sm:$0xff]  ;;  %v1554_v0 = vld [vmem:[#allocation3 + $0xe0] sm:$0xff]  ;;  %v113_v2 = vld [vmem:[%s2218_s1 + $0xd0] sm:$0xff] }
  0x24   :  { %355 = vmatpush.msra.mxu3 %v1423_v21  ;;  %229 = vmatpush.msra.mxu2 %v122_v50  ;;  %v106_v4 = vld [vmem:[%s2218_s1 + $0x98] sm:$0xff]  ;;  %v1564_v6 = vld [vmem:[#allocation3 + $0xd0] sm:$0xff]  ;;  %v1566_v8 = vld [vmem:[#allocation3 + $0xc8] sm:$0xff] }
  0x25   :  { %154 = vmatpush.msra.mxu0 %v99_v22  ;;  %190 = vmatpush.msra.mxu1 %v115_v54  ;;  %v1571_v10 = vld [vmem:[%s2217_s0 + $0x10] sm:$0xff]  ;;  %v110_v12 = vld [vmem:[%s2218_s1 + $0xb8] sm:$0xff]  ;;  %v103_v18 = vld [vmem:[%s2218_s1 + $0x80] sm:$0xff] }
  0x26   :  { %356 = vmatpush.msra.mxu3 %v1429_v23  ;;  %230 = vmatpush.msra.mxu2 %v119_v57  ;;  %v1578_v14 = vld [vmem:[#allocation3 + $0xb8] sm:$0xff]  ;;  %v1580_v16 = vld [vmem:[#allocation3 + $0xb0] sm:$0xff]  ;;  %v107_v20 = vld [vmem:[%s2218_s1 + $0xa0] sm:$0xff] }
  0x27   :  { %155 = vmatpush.msra.mxu0 %v96_v24  ;;  %191 = vmatpush.msra.mxu1 %v112_v60  ;;  %v1591_v22 = vld [vmem:[#allocation3 + $0xa0] sm:$0xff]  ;;  %v1593_v24 = vld [vmem:[#allocation3 + $0x98] sm:$0xff]  ;;  %v104_v28 = vld [vmem:[%s2218_s1 + $0x88] sm:$0xff] }
  0x28   :  { %357 = vmatpush.msra.mxu3 %v1435_v25  ;;  %231 = vmatpush.msra.mxu2 %v116_v61  ;;  %v1603_v29 = vld [vmem:[#allocation3 + $0x88] sm:$0xff]  ;;  %v97_v32 = vld [vmem:[%s2218_s1 + $0x50] sm:$0xff]  ;;  %v1622_v43 = vld [vmem:[%s2217_s0 + $0x18] sm:$0xff] }
  0x29   :  { %156 = vmatpush.msra.mxu0 %v93_v26  ;;  %192 = vmatpush.msra.mxu1 %v109_v62  ;;  %v100_v26 = vld [vmem:[%s2218_s1 + $0x68] sm:$0xff]  ;;  %v101_v33 = vld [vmem:[%s2218_s1 + $0x70] sm:$0xff]  ;;  %v94_v44 = vld [vmem:[%s2218_s1 + $0x38] sm:$0xff] }
  0x2a   :  { %358 = vmatpush.msra.mxu3 %v1441_v27  ;;  %232 = vmatpush.msra.mxu2 %v113_v2  ;;  %v1615_v34 = vld [vmem:[#allocation3 + $0x70] sm:$0xff]  ;;  %v1631_v46 = vld [vmem:[#allocation3 + $0x58] sm:$0xff]  ;;  %v91_v50 = vld [vmem:[%s2218_s1 + $0x20] sm:$0xff] }
  0x2b   :  { %157 = vmatpush.msra.mxu0 %v90_v30  ;;  %193 = vmatpush.msra.mxu1 %v106_v4  ;;  %v1605_v30 = vld [vmem:[#allocation3 + $0x80] sm:$0xff]  ;;  %v1629_v45 = vld [vmem:[#allocation3 + $0x50] sm:$0xff]  ;;  %v98_v49 = vld [vmem:[%s2218_s1 + $0x58] sm:$0xff] }
  0x2c   :  { %359 = vmatpush.msra.mxu3 %v1453_v31  ;;  %233 = vmatpush.msra.mxu2 %v110_v12  ;;  %v1642_v54 = vld [vmem:[#allocation3 + $0x38] sm:$0xff]  ;;  %v1644_v57 = vld [vmem:[#allocation3 + $0x40] sm:$0xff]  ;;  %v88_v61 = vld [vmem:[%s2218_s1 + $0x8] sm:$0xff] }
  0x2d   :  { %158 = vmatpush.msra.mxu0 %v87_v35  ;;  %194 = vmatpush.msra.mxu1 %v103_v18  ;;  %v1617_v35 = vld [vmem:[#allocation3 + $0x68] sm:$0xff]  ;;  %v95_v60 = vld [vmem:[%s2218_s1 + $0x40] sm:$0xff]  ;;  %v1665_v18 = vld [vmem:[#allocation3 + $0x10] sm:$0xff] }
  0x2e   :  { %360 = vmatpush.msra.mxu3 %v1468_v36  ;;  %159 = vmatmul.f32.vlgmr.msra.gmra.mxu0 %v1474_v37  ;;  %v1654_v62 = vld [vmem:[#allocation3 + $0x20] sm:$0xff]  ;;  %v1656_v2 = vld [vmem:[#allocation3 + $0x28] sm:$0xff]  ;;  %2245 = vst [vmem:[#allocation15_spill] sm:$0xff] %v1665_v18 }
  0x2f   :  { %361 = vmatmul.f32.vlgmr.msra.gmra.mxu3 %v1301_v41  ;;  %385 = vmatpush.msrb.mxu0 %v1476_v38  ;;  %2242 = vst [vmem:[#allocation12_spill] sm:$0xff] %v1654_v62  ;;  %v92_v4 = vld [vmem:[%s2218_s1 + $0x28] sm:$0xff] }
  0x30   :  { %365 = vmatpush.msrb.mxu3 %v1478_v39  ;;  %234 = vmatpush.msra.mxu2 %v107_v20  ;;  %2243 = vst [vmem:[#allocation13_spill] sm:$0xff] %v1656_v2  ;;  %v1663_v12 = vld [vmem:[#allocation3 + $0x8] sm:$0xff]  ;;  %v1670_v20 = vld [vmem:[%s2217_s0 + $0x20] sm:$0xff] }
  0x31   :  { %386 = vmatpush.msrb.mxu0 %v1481_v40  ;;  %195 = vmatpush.msra.mxu1 %v100_v26  ;;  %2244 = vst [vmem:[#allocation14_spill] sm:$0xff] %v1663_v12  ;;  %v89_v26 = vld [vmem:[%s2218_s1 + $0x10] sm:$0xff] }
  0x32   :  { %366 = vmatpush.msrb.mxu3 %v1485_v42  ;;  %235 = vmatpush.msra.mxu2 %v104_v28  ;;  %v1692_v28 = vld [vmem:[%s2217_s0 + $0x28] sm:$0xff] }
  0x33   :  { %387 = vmatpush.msrb.mxu0 %v1501_v47  ;;  %196 = vmatpush.msra.mxu1 %v97_v32 }
  0x34   :  { %367 = vmatpush.msrb.mxu3 %v1503_v48  ;;  %236 = vmatpush.msra.mxu2 %v101_v33 }
  0x35   :  { %388 = vmatpush.msrb.mxu0 %v1513_v51  ;;  %197 = vmatpush.msra.mxu1 %v94_v44 }
  0x36   :  { %368 = vmatpush.msrb.mxu3 %v1515_v52  ;;  %162 = vmatmul.f32.gmra.mxu0 %v1520_v53 }
  0x37   :  { %389 = vmatpush.msrb.mxu0 %v1527_v55  ;;  %237 = vmatpush.msra.mxu2 %v98_v49 }
  0x38   :  { %369 = vmatpush.msrb.mxu3 %v1529_v56  ;;  %198 = vmatpush.msra.mxu1 %v91_v50 }
  0x39   :  { %390 = vmatpush.msrb.mxu0 %v1537_v58  ;;  %238 = vmatpush.msra.mxu2 %v95_v60 }
  0x3a   :  { %370 = vmatpush.msrb.mxu3 %v1539_v59  ;;  %199 = vmatpush.msra.mxu1 %v88_v61 }
  0x3b   :  { %391 = vmatpush.msrb.mxu0 %v1552_v63  ;;  %239 = vmatpush.msra.mxu2 %v92_v4 }
  0x3c   :  { %371 = vmatpush.msrb.mxu3 %v1554_v0  ;;  %200 = vmatmul.f32.vlgmr.msra.gmra.mxu1 %v1474_v37 }
  0x3d   :  { %392 = vmatpush.msrb.mxu0 %v1564_v6  ;;  %240 = vmatpush.msra.mxu2 %v89_v26 }
  0x3e   :  { %372 = vmatpush.msrb.mxu3 %v1566_v8  ;;  %165 = vmatmul.f32.gmra.mxu0 %v1571_v10 }
  0x3f   :  { %393 = vmatpush.msrb.mxu0 %v1578_v14  ;;  %432 = vmatpush.msrb.mxu1 %v1364_v1 }
  0x40   :  { %373 = vmatpush.msrb.mxu3 %v1580_v16  ;;  %241 = vmatmul.f32.vlgmr.msra.gmra.mxu2 %v1474_v37  ;;  %v1713_v37 = vld [vmem:[%s2217_s0 + $0x30] sm:$0xff] }
  0x41   :  { %394 = vmatpush.msrb.mxu0 %v1591_v22  ;;  %452 = vmatpush.msrb.mxu2 %v1478_v39 }
  0x42   :  { %374 = vmatpush.msrb.mxu3 %v1593_v24  ;;  %433 = vmatpush.msrb.mxu1 %v1370_v3 }
  0x43   :  { %395 = vmatpush.msrb.mxu0 %v1603_v29  ;;  %453 = vmatpush.msrb.mxu2 %v1485_v42 }
  0x44   :  { %375 = vmatpush.msrb.mxu3 %v1605_v30  ;;  %434 = vmatpush.msrb.mxu1 %v1375_v5 }
  0x45   :  { %396 = vmatpush.msrb.mxu0 %v1615_v34  ;;  %203 = vmatmul.f32.gmra.mxu1 %v1520_v53 }
  0x46   :  { %376 = vmatpush.msrb.mxu3 %v1617_v35  ;;  %168 = vmatmul.f32.gmra.mxu0 %v1622_v43 }
  0x47   :  { %397 = vmatpush.msrb.mxu0 %v1631_v46  ;;  %454 = vmatpush.msrb.mxu2 %v1503_v48 }
  0x48   :  { %377 = vmatpush.msrb.mxu3 %v1629_v45  ;;  %435 = vmatpush.msrb.mxu1 %v1381_v7 }
  0x49   :  { %398 = vmatpush.msrb.mxu0 %v1644_v57  ;;  %455 = vmatpush.msrb.mxu2 %v1515_v52 }
  0x4a   :  { %378 = vmatpush.msrb.mxu3 %v1642_v54  ;;  %436 = vmatpush.msrb.mxu1 %v1387_v9 }
  0x4b   :  { %399 = vmatpush.msrb.mxu0 %v1656_v2  ;;  %244 = vmatmul.f32.gmra.mxu2 %v1520_v53  ;;  %v1734_v53 = vld [vmem:[%s2217_s0 + $0x38] sm:$0xff] }
  0x4c   :  { %379 = vmatpush.msrb.mxu3 %v1654_v62  ;;  %456 = vmatpush.msrb.mxu2 %v1529_v56 }
  0x4d   :  { %400 = vmatpush.msrb.mxu0 %v1665_v18  ;;  %437 = vmatpush.msrb.mxu1 %v1393_v11 }
  0x4e   :  { %380 = vmatpush.msrb.mxu3 %v1663_v12  ;;  %171 = vmatmul.f32.gmra.mxu0 %v1670_v20 }
  0x4f   :  { %381 = vmatmul.f32.vlgmr.msrb.gmra.mxu3 %v1301_v41  ;;  %516 = vmatpush.msra.mxu0 %v1364_v1 }
  0x50   :  { %472 = vmatpush.msra.mxu3 %v1476_v38  ;;  %457 = vmatpush.msrb.mxu2 %v1539_v59 }
  0x51   :  { %517 = vmatpush.msra.mxu0 %v1370_v3  ;;  %438 = vmatpush.msrb.mxu1 %v1399_v13 }
  0x52   :  { %473 = vmatpush.msra.mxu3 %v1481_v40  ;;  %206 = vmatmul.f32.gmra.mxu1 %v1571_v10 }
  0x53   :  { %458 = vmatpush.msrb.mxu2 %v1554_v0  ;;  %439 = vmatpush.msrb.mxu1 %v1405_v15 }
  0x54   :  { %474 = vmatpush.msra.mxu3 %v1501_v47  ;;  %247 = vmatmul.f32.gmra.mxu2 %v1571_v10  ;;  %v135_v10 = vld [vmem:[%s2220_s3] sm:$0x7] }
  0x55   :  { %459 = vmatpush.msrb.mxu2 %v1566_v8  ;;  %440 = vmatpush.msrb.mxu1 %v1411_v17  ;;  %v137_v32 = vperm.slane %v135_v10, 0 }
  0x56   :  { %174 = vmatmul.f32.gmra.mxu0 %v1692_v28  ;;  %475 = vmatpush.msra.mxu3 %v1513_v51 }
  0x57   :  { %460 = vmatpush.msrb.mxu2 %v1580_v16  ;;  %441 = vmatpush.msrb.mxu1 %v1417_v19 }
  0x58   :  { %476 = vmatpush.msra.mxu3 %v1527_v55  ;;  %518 = vmatpush.msra.mxu0 %v1375_v5 }
  0x59   :  { %461 = vmatpush.msrb.mxu2 %v1593_v24  ;;  %442 = vmatpush.msrb.mxu1 %v1423_v21 }
  0x5a   :  { %477 = vmatpush.msra.mxu3 %v1537_v58  ;;  %209 = vmatmul.f32.gmra.mxu1 %v1622_v43 }
  0x5b   :  { %462 = vmatpush.msrb.mxu2 %v1605_v30  ;;  %443 = vmatpush.msrb.mxu1 %v1429_v23 }
  0x5c   :  { %478 = vmatpush.msra.mxu3 %v1552_v63  ;;  %250 = vmatmul.f32.gmra.mxu2 %v1622_v43 }
  0x5d   :  { %463 = vmatpush.msrb.mxu2 %v1617_v35  ;;  %444 = vmatpush.msrb.mxu1 %v1435_v25 }
  0x5e   :  { %177 = vmatmul.f32.gmra.mxu0 %v1713_v37  ;;  %479 = vmatpush.msra.mxu3 %v1564_v6 }
  0x5f   :  { %464 = vmatpush.msrb.mxu2 %v1629_v45  ;;  %445 = vmatpush.msrb.mxu1 %v1441_v27 }
  0x60   :  { %480 = vmatpush.msra.mxu3 %v1578_v14  ;;  %519 = vmatpush.msra.mxu0 %v1381_v7 }
  0x61   :  { %465 = vmatpush.msrb.mxu2 %v1642_v54  ;;  %446 = vmatpush.msrb.mxu1 %v1453_v31 }
  0x62   :  { %481 = vmatpush.msra.mxu3 %v1591_v22  ;;  %212 = vmatmul.f32.gmra.mxu1 %v1670_v20 }
  0x63   :  { %466 = vmatpush.msrb.mxu2 %v1654_v62  ;;  %447 = vmatpush.msrb.mxu1 %v1468_v36 }
  0x64   :  { %482 = vmatpush.msra.mxu3 %v1603_v29  ;;  %253 = vmatmul.f32.gmra.mxu2 %v1670_v20 }
  0x65   :  { %467 = vmatpush.msrb.mxu2 %v1663_v12  ;;  %536 = vmatpush.msra.mxu1 %v1478_v39 }
  0x66   :  { %180 = vmatmul.f32.gmra.mxu0 %v1734_v53  ;;  %483 = vmatpush.msra.mxu3 %v1615_v34 }
  0x67   :  { %520 = vmatpush.msra.mxu0 %v1387_v9  ;;  %556 = vmatpush.msra.mxu2 %v1476_v38 }
  0x68   :  { %484 = vmatpush.msra.mxu3 %v1631_v46  ;;  %537 = vmatpush.msra.mxu1 %v1485_v42 }
  0x69   :  { %521 = vmatpush.msra.mxu0 %v1393_v11  ;;  %557 = vmatpush.msra.mxu2 %v1481_v40 }
  0x6a   :  { %485 = vmatpush.msra.mxu3 %v1644_v57  ;;  %538 = vmatpush.msra.mxu1 %v1503_v48 }
  0x6b   :  { %215 = vmatmul.f32.gmra.mxu1 %v1692_v28  ;;  %522 = vmatpush.msra.mxu0 %v1399_v13 }
  0x6c   :  { %486 = vmatpush.msra.mxu3 %v1656_v2  ;;  %558 = vmatpush.msra.mxu2 %v1501_v47 }
  0x6d   :  { %539 = vmatpush.msra.mxu1 %v1515_v52  ;;  %523 = vmatpush.msra.mxu0 %v1405_v15 }
  0x6e   :  { %401 = vmatmul.f32.vlgmr.msrb.gmra.mxu0 %v1301_v41  ;;  %487 = vmatpush.msra.mxu3 %v1665_v18 }
  0x6f   :  { %559 = vmatpush.msra.mxu2 %v1513_v51  ;;  %540 = vmatpush.msra.mxu1 %v1529_v56 }
  0x70   :  { %600 = vmatpush.msrb.mxu3 %v1364_v1  ;;  %256 = vmatmul.f32.gmra.mxu2 %v1692_v28 }
  0x71   :  { %524 = vmatpush.msra.mxu0 %v1411_v17  ;;  %560 = vmatpush.msra.mxu2 %v1527_v55 }
  0x72   :  { %601 = vmatpush.msrb.mxu3 %v1370_v3  ;;  %541 = vmatpush.msra.mxu1 %v1539_v59 }
  0x73   :  { %525 = vmatpush.msra.mxu0 %v1417_v19  ;;  %561 = vmatpush.msra.mxu2 %v1537_v58 }
  0x74   :  { %602 = vmatpush.msrb.mxu3 %v1375_v5  ;;  %542 = vmatpush.msra.mxu1 %v1554_v0 }
  0x75   :  { %218 = vmatmul.f32.gmra.mxu1 %v1713_v37  ;;  %526 = vmatpush.msra.mxu0 %v1423_v21 }
  0x76   :  { %562 = vmatpush.msra.mxu2 %v1552_v63  ;;  %543 = vmatpush.msra.mxu1 %v1566_v8 }
  0x77   :  { %527 = vmatpush.msra.mxu0 %v1429_v23  ;;  %603 = vmatpush.msrb.mxu3 %v1381_v7 }
  0x78   :  { %563 = vmatpush.msra.mxu2 %v1564_v6  ;;  %544 = vmatpush.msra.mxu1 %v1580_v16 }
  0x79   :  { %259 = vmatmul.f32.gmra.mxu2 %v1713_v37  ;;  %528 = vmatpush.msra.mxu0 %v1435_v25  ;;  %v1857_v37 = vperm.slane %v135_v10, 1 }
  0x7a   :  { %564 = vmatpush.msra.mxu2 %v1578_v14  ;;  %545 = vmatpush.msra.mxu1 %v1593_v24 }
  0x7b   :  { %529 = vmatpush.msra.mxu0 %v1441_v27  ;;  %604 = vmatpush.msrb.mxu3 %v1387_v9  ;;  %2251 = vst [vmem:[#allocation21_spill] sm:$0xff] %v1857_v37 }
  0x7c   :  { %565 = vmatpush.msra.mxu2 %v1591_v22  ;;  %546 = vmatpush.msra.mxu1 %v1605_v30 }
  0x7d   :  { %221 = vmatmul.f32.gmra.mxu1 %v1734_v53  ;;  %530 = vmatpush.msra.mxu0 %v1453_v31 }
  0x7e   :  { %566 = vmatpush.msra.mxu2 %v1603_v29  ;;  %547 = vmatpush.msra.mxu1 %v1617_v35 }
  0x7f   :  { %531 = vmatpush.msra.mxu0 %v1468_v36  ;;  %605 = vmatpush.msrb.mxu3 %v1393_v11 }
  0x80   :  { %567 = vmatpush.msra.mxu2 %v1615_v34  ;;  %548 = vmatpush.msra.mxu1 %v1629_v45 }
  0x81   :  { %262 = vmatmul.f32.gmra.mxu2 %v1734_v53  ;;  %620 = vmatpush.msrb.mxu0 %v1478_v39 }
  0x82   :  { %568 = vmatpush.msra.mxu2 %v1631_v46  ;;  %549 = vmatpush.msra.mxu1 %v1642_v54 }
  0x83   :  { %621 = vmatpush.msrb.mxu0 %v1485_v42  ;;  %606 = vmatpush.msrb.mxu3 %v1399_v13 }
  0x84   :  { %569 = vmatpush.msra.mxu2 %v1644_v57  ;;  %550 = vmatpush.msra.mxu1 %v1654_v62 }
  0x85   :  { %622 = vmatpush.msrb.mxu0 %v1503_v48  ;;  %607 = vmatpush.msrb.mxu3 %v1405_v15 }
  0x86   :  { %570 = vmatpush.msra.mxu2 %v1656_v2  ;;  %551 = vmatpush.msra.mxu1 %v1663_v12 }
  0x87   :  { %623 = vmatpush.msrb.mxu0 %v1515_v52  ;;  %608 = vmatpush.msrb.mxu3 %v1411_v17 }
  0x88   :  { %571 = vmatpush.msra.mxu2 %v1665_v18 }
  0x89   :  { %624 = vmatpush.msrb.mxu0 %v1529_v56  ;;  %609 = vmatpush.msrb.mxu3 %v1417_v19 }
  0x8b   :  { %625 = vmatpush.msrb.mxu0 %v1539_v59  ;;  %610 = vmatpush.msrb.mxu3 %v1423_v21 }
  0x8d   :  { %626 = vmatpush.msrb.mxu0 %v1554_v0  ;;  %611 = vmatpush.msrb.mxu3 %v1429_v23 }
  0x8f   :  { %627 = vmatpush.msrb.mxu0 %v1566_v8  ;;  %612 = vmatpush.msrb.mxu3 %v1435_v25 }
  0x91   :  { %628 = vmatpush.msrb.mxu0 %v1580_v16  ;;  %613 = vmatpush.msrb.mxu3 %v1441_v27 }
  0x93   :  { %629 = vmatpush.msrb.mxu0 %v1593_v24  ;;  %614 = vmatpush.msrb.mxu3 %v1453_v31 }
  0x95   :  { %630 = vmatpush.msrb.mxu0 %v1605_v30  ;;  %615 = vmatpush.msrb.mxu3 %v1468_v36 }
  0x97   :  { %631 = vmatpush.msrb.mxu0 %v1617_v35 }
  0x99   :  { %632 = vmatpush.msrb.mxu0 %v1629_v45 }
  0x9b   :  { %633 = vmatpush.msrb.mxu0 %v1642_v54 }
  0x9d   :  { %634 = vmatpush.msrb.mxu0 %v1654_v62  ;;  %v1866_v62 = vperm.slane %v135_v10, 2 }
  0x9f   :  { %635 = vmatpush.msrb.mxu0 %v1663_v12 }
  0xab   :  { %v160_v41 = vpop.f32.mrf.mxu0 }
  0xac   :  { %v161_v53 = vadd.f32 %v160_v41, %v137_v32 }
  0xb2   :  { %v362_v20 = vpop.f32.mrf.mxu3 }
  0xb3   :  { %v163_v33 = vpop.f32.mrf.mxu0 }
  0xb4   :  { %v1847_v43 = vadd.f32 %v163_v33, %v137_v32  ;;  %v405_v33 = vadd.f32 %v362_v20, %v161_v53 }
  0xb6   :  { %2246 = vst [vmem:[#allocation16_spill] sm:$0xff] %v1847_v43 }
  0xb9   :  { %v201_v12 = vpop.f32.mrf.mxu1 }
  0xba   :  { %v202_v43 = vadd.f32 %v201_v12, %v1857_v37 }
  0xbb   :  { %v166_v44 = vpop.f32.mrf.mxu0 }
  0xbc   :  { %v1849_v49 = vadd.f32 %v166_v44, %v137_v32 }
  0xbe   :  { %2247 = vst [vmem:[#allocation17_spill] sm:$0xff] %v1849_v49  ;;  %v406_v49 = vmul.f32 0.5, %v405_v33 }
  0xc0   :  { %1120 = vtanh.f32 %v406_v49 }
  0xc3   :  { %v169_v50 = vpop.f32.mrf.mxu0  ;;  %v242_v36 = vpop.f32.mrf.mxu2 }
  0xc4   :  { %v1851_v60 = vadd.f32 %v169_v50, %v137_v32 }
  0xc6   :  { %2248 = vst [vmem:[#allocation18_spill] sm:$0xff] %v1851_v60  ;;  %v1121_v41 = vpop.eup %1120 }
  0xc7   :  { %v408_v53 = vmul.f32 0.5, %v1121_v41 }
  0xcb   :  { %v172_v61 = vpop.f32.mrf.mxu0 }
  0xcc   :  { %v1853_v4 = vadd.f32 %v172_v61, %v137_v32 }
  0xce   :  { %2249 = vst [vmem:[#allocation19_spill] sm:$0xff] %v1853_v4  ;;  %v1862_v61 = vpop.f32.mrf.mxu2 }
  0xcf   :  { %2253 = vst [vmem:[#allocation23_spill] sm:$0xff] %v1862_v61 }
  0xd2   :  { %v382_v44 = vpop.f32.mrf.mxu3 }
  0xd3   :  { %v175_v26 = vpop.f32.mrf.mxu0  ;;  %v410_v60 = vadd.f32 %v382_v44, %v202_v43 }
  0xd4   :  { %v1855_v28 = vadd.f32 %v175_v26, %v137_v32 }
  0xd5   :  { %v411_v4 = vmul.f32 0.5, %v410_v60  ;;  %v409_v60 = vadd.f32 0.5, %v408_v53 }
  0xd6   :  { %2250 = vst [vmem:[#allocation20_spill] sm:$0xff] %v1855_v28 }
  0xd7   :  { %1122 = vtanh.f32 %v411_v4  ;;  %v248_v20 = vpop.f32.mrf.mxu2  ;;  %v243_v4 = vadd.f32 %v242_v36, %v1866_v62 }
  0xd8   :  { %v1869_v12 = vadd.f32 %v248_v20, %v1866_v62 }
  0xda   :  { %2255 = vst [vmem:[#allocation25_spill] sm:$0xff] %v1869_v12 }
  0xdb   :  { %v178_v18 = vpop.f32.mrf.mxu0 }
  0xdc   :  { %v1860_v50 = vadd.f32 %v178_v18, %v137_v32  ;;  %v1874_v18 = vld [vmem:[%s2221_s4] ss:$0 sm:$0xff] }
  0xdd   :  { %v1123_v43 = vpop.eup %1122 }
  0xde   :  { %2252 = vst [vmem:[#allocation22_spill] sm:$0xff] %v1860_v50  ;;  %v413_v33 = vmul.f32 0.5, %v1123_v43 }
  0xdf   :  { %v251_v44 = vpop.f32.mrf.mxu2 }
  0xe0   :  { %v414_v41 = vadd.f32 0.5, %v413_v33 }
  0xe2   :  { %v424_v53 = vmul.f32 0.0, %v414_v41 }
  0xe3   :  { %v181_v26 = vpop.f32.mrf.mxu0 }
  0xe4   :  { %v1864_v28 = vadd.f32 %v181_v26, %v137_v32  ;;  %v1879_v26 = vadd.f32 %v251_v44, %v1866_v62 }
  0xe6   :  { %2254 = vst [vmem:[#allocation24_spill] sm:$0xff] %v1864_v28  ;;  %v422_v28 = vsub.f32 1.0, %v414_v41 }
  0xe7   :  { %2256 = vst [vmem:[#allocation26_spill] sm:$0xff] %v1879_v26  ;;  %v254_v50 = vpop.f32.mrf.mxu2  ;;  %v2272_v26 = vld [vmem:[#allocation21_spill] sm:$0xff] }
  0xe8   :  { %v1882_v12 = vadd.f32 %v254_v50, %v1866_v62  ;;  %v2260_v50 = vld [vmem:[#allocation12_spill] sm:$0xff] }
  0xea   :  { %2257 = vst [vmem:[#allocation27_spill] sm:$0xff] %v1882_v12 }
  0xeb   :  { %v402_v49 = vpop.f32.mrf.mxu0 }
  0xec   :  { %v418_v32 = vadd.f32 %v1874_v18, %v402_v49 }
  0xee   :  { %v419_v10 = vmul.f32 %v418_v32, %v409_v60  ;;  %v2262_v60 = vld [vmem:[#allocation11_spill] sm:$0xff]  ;;  %v2263_v32 = vld [vmem:[#allocation14_spill] sm:$0xff] }
  0xf0   :  { %v420_v20 = vadd.f32 %v419_v10, %v243_v4  ;;  %v204_v4 = vpop.f32.mrf.mxu1 }
  0xf2   :  { %1124 = vtanh.f32 %v420_v20 }
  0xf3   :  { %v257_v36 = vpop.f32.mrf.mxu2 }
  0xf4   :  { %v1891_v43 = vadd.f32 %v257_v36, %v1866_v62 }
  0xf6   :  { %2258 = vst [vmem:[#allocation28_spill] sm:$0xff] %v1891_v43 }
  0xf8   :  { %v1125_v61 = vpop.eup %1124  ;;  %v1943_v33 = vpop.f32.mrf.mxu1 }
  0xf9   :  { %v423_v37 = vmul.f32 %v1125_v61, %v422_v28  ;;  %v2261_v61 = vld [vmem:[#allocation15_spill] sm:$0xff]  ;;  %2264 = vst [vmem:[#allocation30_spill] sm:$0xff] %v1943_v33 }
  0xfb   :  { %v1884_v49 = vadd.f32 %v424_v53, %v423_v37 }
  0xfc   :  { %v260_v28 = vpop.f32.mrf.mxu2 }
  0xfd   :  { %448 = vmatmul.f32.vlgmr.msrb.gmra.mxu1 %v1884_v49  ;;  %468 = vmatmul.f32.vlgmr.msrb.gmra.mxu2 %v1884_v49  ;;  %v1906_v37 = vadd.f32 %v260_v28, %v1866_v62 }
  0xfe   :  { %488 = vmatmul.f32.vlgmr.msra.gmra.mxu3 %v1884_v49  ;;  %640 = vmatpush.msrb.mxu1 %v1476_v38 }
  0xff   :  { %684 = vmatpush.msrb.mxu2 %v1364_v1  ;;  %704 = vmatpush.msra.mxu3 %v1478_v39  ;;  %2259 = vst [vmem:[#allocation29_spill] sm:$0xff] %v1906_v37  ;;  %v2271_v37 = vld [vmem:[#allocation16_spill] sm:$0xff] }
 0x100   :  { %641 = vmatpush.msrb.mxu1 %v1481_v40  ;;  %v1945_v10 = vpop.f32.mrf.mxu1 }
 0x101   :  { %685 = vmatpush.msrb.mxu2 %v1370_v3  ;;  %705 = vmatpush.msra.mxu3 %v1485_v42  ;;  %2265 = vst [vmem:[#allocation31_spill] sm:$0xff] %v1945_v10 }
 0x102   :  { %642 = vmatpush.msrb.mxu1 %v1501_v47 }
 0x103   :  { %686 = vmatpush.msrb.mxu2 %v1375_v5  ;;  %706 = vmatpush.msra.mxu3 %v1503_v48 }
 0x104   :  { %643 = vmatpush.msrb.mxu1 %v1513_v51  ;;  %v1955_v36 = vpop.f32.mrf.mxu2 }
 0x105   :  { %687 = vmatpush.msrb.mxu2 %v1381_v7  ;;  %707 = vmatpush.msra.mxu3 %v1515_v52  ;;  %2270 = vst [vmem:[#allocation36_spill] sm:$0xff] %v1955_v36 }
 0x106   :  { %644 = vmatpush.msrb.mxu1 %v1527_v55 }
 0x107   :  { %688 = vmatpush.msrb.mxu2 %v1387_v9  ;;  %708 = vmatpush.msra.mxu3 %v1529_v56 }
 0x108   :  { %645 = vmatpush.msrb.mxu1 %v1537_v58  ;;  %v1947_v44 = vpop.f32.mrf.mxu1 }
 0x109   :  { %689 = vmatpush.msrb.mxu2 %v1393_v11  ;;  %709 = vmatpush.msra.mxu3 %v1539_v59  ;;  %2266 = vst [vmem:[#allocation32_spill] sm:$0xff] %v1947_v44 }
 0x10a   :  { %646 = vmatpush.msrb.mxu1 %v1552_v63 }
 0x10b   :  { %690 = vmatpush.msrb.mxu2 %v1399_v13  ;;  %710 = vmatpush.msra.mxu3 %v1554_v0 }
 0x10c   :  { %647 = vmatpush.msrb.mxu1 %v1564_v6 }
 0x10d   :  { %691 = vmatpush.msrb.mxu2 %v1405_v15  ;;  %711 = vmatpush.msra.mxu3 %v1566_v8 }
 0x10e   :  { %648 = vmatpush.msrb.mxu1 %v1578_v14 }
 0x10f   :  { %692 = vmatpush.msrb.mxu2 %v1411_v17  ;;  %712 = vmatpush.msra.mxu3 %v1580_v16 }
 0x110   :  { %649 = vmatpush.msrb.mxu1 %v1591_v22  ;;  %v1949_v20 = vpop.f32.mrf.mxu1 }
 0x111   :  { %693 = vmatpush.msrb.mxu2 %v1417_v19  ;;  %713 = vmatpush.msra.mxu3 %v1593_v24  ;;  %2267 = vst [vmem:[#allocation33_spill] sm:$0xff] %v1949_v20 }
 0x112   :  { %650 = vmatpush.msrb.mxu1 %v1603_v29 }
 0x113   :  { %694 = vmatpush.msrb.mxu2 %v1423_v21  ;;  %714 = vmatpush.msra.mxu3 %v1605_v30 }
 0x114   :  { %651 = vmatpush.msrb.mxu1 %v1615_v34 }
 0x115   :  { %695 = vmatpush.msrb.mxu2 %v1429_v23  ;;  %715 = vmatpush.msra.mxu3 %v1617_v35 }
 0x116   :  { %652 = vmatpush.msrb.mxu1 %v1631_v46 }
 0x117   :  { %696 = vmatpush.msrb.mxu2 %v1435_v25  ;;  %716 = vmatpush.msra.mxu3 %v1629_v45 }
 0x118   :  { %653 = vmatpush.msrb.mxu1 %v1644_v57  ;;  %v1951_v41 = vpop.f32.mrf.mxu1 }
 0x119   :  { %697 = vmatpush.msrb.mxu2 %v1441_v27  ;;  %717 = vmatpush.msra.mxu3 %v1642_v54  ;;  %2268 = vst [vmem:[#allocation34_spill] sm:$0xff] %v1951_v41 }
 0x11a   :  { %654 = vmatpush.msrb.mxu1 %v1656_v2 }
 0x11b   :  { %698 = vmatpush.msrb.mxu2 %v1453_v31  ;;  %718 = vmatpush.msra.mxu3 %v2260_v50 }
 0x11c   :  { %655 = vmatpush.msrb.mxu1 %v2261_v61 }
 0x11d   :  { %699 = vmatpush.msrb.mxu2 %v2262_v60  ;;  %719 = vmatpush.msra.mxu3 %v2263_v32  ;;  %v205_v32 = vadd.f32 %v204_v4, %v2272_v26 }
 0x120   :  { %v1953_v53 = vpop.f32.mrf.mxu1 }
 0x121   :  { %2269 = vst [vmem:[#allocation35_spill] sm:$0xff] %v1953_v53  ;;  %v2273_v53 = vld [vmem:[#allocation23_spill] sm:$0xff] }
 0x122   :  { %v246_v36 = vadd.f32 %v2273_v53, %v1866_v62  ;;  %v2282_v53 = vld [vmem:[#allocation25_spill] sm:$0xff] }
 0x17a   :  { %v449_v28 = vpop.f32.mrf.mxu1 }
 0x17b   :  { %v492_v43 = vadd.f32 %v449_v28, %v2271_v37 }
 0x17d   :  { %v493_v12 = vmul.f32 0.5, %v492_v43 }
 0x17f   :  { %1126 = vtanh.f32 %v493_v12 }
 0x180   :  { %v469_v33 = vpop.f32.mrf.mxu2 }
 0x181   :  { %v497_v60 = vadd.f32 %v469_v33, %v205_v32  ;;  %v489_v44 = vpop.f32.mrf.mxu3 }
 0x182   :  { %v502_v41 = vadd.f32 %v1874_v18, %v489_v44 }
 0x183   :  { %v498_v10 = vmul.f32 0.5, %v497_v60 }
 0x185   :  { %v1127_v61 = vpop.eup %1126  ;;  %1128 = vtanh.f32 %v498_v10 }
 0x186   :  { %v495_v20 = vmul.f32 0.5, %v1127_v61 }
 0x188   :  { %v496_v50 = vadd.f32 0.5, %v495_v20 }
 0x18a   :  { %v503_v31 = vmul.f32 %v502_v41, %v496_v50 }
 0x18b   :  { %v1129_v2 = vpop.eup %1128 }
 0x18c   :  { %v500_v37 = vmul.f32 0.5, %v1129_v2  ;;  %v504_v43 = vadd.f32 %v503_v31, %v246_v36 }
 0x18e   :  { %1130 = vtanh.f32 %v504_v43  ;;  %v501_v4 = vadd.f32 0.5, %v500_v37 }
 0x190   :  { %v506_v12 = vsub.f32 1.0, %v501_v4  ;;  %v508_v60 = vmul.f32 %v501_v4, %v1884_v49 }
 0x194   :  { %v1131_v28 = vpop.eup %1130 }
 0x195   :  { %v507_v32 = vmul.f32 %v1131_v28, %v506_v12 }
 0x197   :  { %v1963_v33 = vadd.f32 %v508_v60, %v507_v32  ;;  %v2028_v32 = vld [vmem:[#allocation3 + $0x168] sm:$0xff] }
 0x199   :  { %532 = vmatmul.f32.vlgmr.msra.gmra.mxu0 %v1963_v33  ;;  %552 = vmatmul.f32.vlgmr.msra.gmra.mxu1 %v1963_v33 }
 0x19a   :  { %572 = vmatmul.f32.vlgmr.msra.gmra.mxu2 %v1963_v33  ;;  %724 = vmatpush.msra.mxu0 %v1476_v38 }
 0x19b   :  { %768 = vmatpush.msra.mxu1 %v1364_v1  ;;  %788 = vmatpush.msra.mxu2 %v1478_v39  ;;  %v2274_v1 = vld [vmem:[#allocation13_spill] sm:$0xff] }
 0x19c   :  { %725 = vmatpush.msra.mxu0 %v1481_v40 }
 0x19d   :  { %769 = vmatpush.msra.mxu1 %v1370_v3  ;;  %789 = vmatpush.msra.mxu2 %v1485_v42  ;;  %v2275_v3 = vld [vmem:[#allocation10_spill] sm:$0xff] }
 0x19e   :  { %726 = vmatpush.msra.mxu0 %v1501_v47 }
 0x19f   :  { %770 = vmatpush.msra.mxu1 %v1375_v5  ;;  %790 = vmatpush.msra.mxu2 %v1503_v48  ;;  %v2276_v5 = vld [vmem:[#allocation12_spill] sm:$0xff] }
 0x1a0   :  { %727 = vmatpush.msra.mxu0 %v1513_v51 }
 0x1a1   :  { %771 = vmatpush.msra.mxu1 %v1381_v7  ;;  %791 = vmatpush.msra.mxu2 %v1515_v52  ;;  %v2277_v7 = vld [vmem:[#allocation15_spill] sm:$0xff] }
 0x1a2   :  { %728 = vmatpush.msra.mxu0 %v1527_v55 }
 0x1a3   :  { %772 = vmatpush.msra.mxu1 %v1387_v9  ;;  %792 = vmatpush.msra.mxu2 %v1529_v56  ;;  %v2278_v9 = vld [vmem:[#allocation11_spill] sm:$0xff] }
 0x1a4   :  { %729 = vmatpush.msra.mxu0 %v1537_v58 }
 0x1a5   :  { %773 = vmatpush.msra.mxu1 %v1393_v11  ;;  %793 = vmatpush.msra.mxu2 %v1539_v59  ;;  %v2279_v11 = vld [vmem:[#allocation14_spill] sm:$0xff] }
 0x1a6   :  { %730 = vmatpush.msra.mxu0 %v1552_v63 }
 0x1a7   :  { %774 = vmatpush.msra.mxu1 %v1399_v13  ;;  %794 = vmatpush.msra.mxu2 %v1554_v0  ;;  %v2280_v13 = vld [vmem:[#allocation30_spill] sm:$0xff] }
 0x1a8   :  { %731 = vmatpush.msra.mxu0 %v1564_v6 }
 0x1a9   :  { %775 = vmatpush.msra.mxu1 %v1405_v15  ;;  %795 = vmatpush.msra.mxu2 %v1566_v8  ;;  %v208_v15 = vadd.f32 %v2280_v13, %v2272_v26 }
 0x1aa   :  { %732 = vmatpush.msra.mxu0 %v1578_v14 }
 0x1ab   :  { %776 = vmatpush.msra.mxu1 %v1411_v17  ;;  %796 = vmatpush.msra.mxu2 %v1580_v16 }
 0x1ac   :  { %733 = vmatpush.msra.mxu0 %v1591_v22 }
 0x1ad   :  { %777 = vmatpush.msra.mxu1 %v1417_v19  ;;  %797 = vmatpush.msra.mxu2 %v1593_v24 }
 0x1ae   :  { %734 = vmatpush.msra.mxu0 %v1603_v29 }
 0x1af   :  { %778 = vmatpush.msra.mxu1 %v1423_v21  ;;  %798 = vmatpush.msra.mxu2 %v1605_v30  ;;  %v2281_v21 = vld [vmem:[#allocation17_spill] sm:$0xff] }
 0x1b0   :  { %735 = vmatpush.msra.mxu0 %v1615_v34 }
 0x1b1   :  { %779 = vmatpush.msra.mxu1 %v1429_v23  ;;  %799 = vmatpush.msra.mxu2 %v1617_v35 }
 0x1b2   :  { %736 = vmatpush.msra.mxu0 %v1631_v46 }
 0x1b3   :  { %780 = vmatpush.msra.mxu1 %v1435_v25  ;;  %800 = vmatpush.msra.mxu2 %v1629_v45 }
 0x1b4   :  { %737 = vmatpush.msra.mxu0 %v1644_v57 }
 0x1b5   :  { %781 = vmatpush.msra.mxu1 %v1441_v27  ;;  %801 = vmatpush.msra.mxu2 %v1642_v54 }
 0x1b6   :  { %738 = vmatpush.msra.mxu0 %v2274_v1 }
 0x1b7   :  { %782 = vmatpush.msra.mxu1 %v2275_v3  ;;  %802 = vmatpush.msra.mxu2 %v2276_v5  ;;  %v2038_v3 = vld [vmem:[#allocation3 + $0x138] sm:$0xff] }
 0x1b8   :  { %739 = vmatpush.msra.mxu0 %v2277_v7 }
 0x1b9   :  { %783 = vmatpush.msra.mxu1 %v2278_v9  ;;  %803 = vmatpush.msra.mxu2 %v2279_v11 }
 0x216   :  { %v533_v17 = vpop.f32.mrf.mxu0  ;;  %v553_v19 = vpop.f32.mrf.mxu1 }
 0x217   :  { %v576_v23 = vadd.f32 %v533_v17, %v2281_v21  ;;  %v581_v25 = vadd.f32 %v553_v19, %v208_v15 }
 0x219   :  { %v577_v27 = vmul.f32 0.5, %v576_v23  ;;  %v582_v31 = vmul.f32 0.5, %v581_v25 }
 0x21b   :  { %1132 = vtanh.f32 %v577_v27  ;;  %v2118_v27 = vld [vmem:[#allocation3 + $0x178] sm:$0xff] }
 0x21c   :  { %1134 = vtanh.f32 %v582_v31  ;;  %v1187_v31 = vld [vmem:[#allocation3 + $0x170] sm:$0xff] }
 0x21d   :  { %v573_v49 = vpop.f32.mrf.mxu2 }
 0x21e   :  { %v586_v44 = vadd.f32 %v1874_v18, %v573_v49  ;;  %v1189_v49 = vld [vmem:[#allocation3 + $0x158] sm:$0xff] }
 0x221   :  { %v1133_v2 = vpop.eup %1132 }
 0x222   :  { %v579_v50 = vmul.f32 0.5, %v1133_v2  ;;  %v1135_v61 = vpop.eup %1134  ;;  %v2122_v2 = vld [vmem:[#allocation3 + $0x160] sm:$0xff] }
 0x223   :  { %v584_v41 = vmul.f32 0.5, %v1135_v61  ;;  %v1191_v61 = vld [vmem:[#allocation3 + $0x140] sm:$0xff] }
 0x224   :  { %v580_v10 = vadd.f32 0.5, %v579_v50  ;;  %v2126_v50 = vld [vmem:[#allocation3 + $0x148] sm:$0xff] }
 0x225   :  { %v585_v37 = vadd.f32 0.5, %v584_v41  ;;  %v1195_v41 = vld [vmem:[#allocation3 + $0x110] sm:$0xff] }
 0x226   :  { %v587_v20 = vmul.f32 %v586_v44, %v580_v10  ;;  %v2130_v10 = vld [vmem:[#allocation3 + $0x130] sm:$0xff]  ;;  %v1193_v44 = vld [vmem:[#allocation3 + $0x128] sm:$0xff] }
 0x227   :  { %v590_v43 = vsub.f32 1.0, %v585_v37  ;;  %v592_v12 = vmul.f32 %v585_v37, %v1963_v33  ;;  %v2033_v33 = vld [vmem:[#allocation3 + $0x150] sm:$0xff]  ;;  %v2142_v37 = vld [vmem:[#allocation3 + $0xe8] sm:$0xff] }
 0x228   :  { %v588_v36 = vadd.f32 %v587_v20, %v2282_v53  ;;  %v2134_v20 = vld [vmem:[#allocation3 + $0x118] sm:$0xff]  ;;  %v2138_v53 = vld [vmem:[#allocation3 + $0x100] sm:$0xff] }
 0x22a   :  { %1136 = vtanh.f32 %v588_v36  ;;  %v1197_v36 = vld [vmem:[#allocation3 + $0xf8] sm:$0xff] }
 0x230   :  { %v1137_v4 = vpop.eup %1136 }
 0x231   :  { %v591_v28 = vmul.f32 %v1137_v4, %v590_v43  ;;  %v1199_v43 = vld [vmem:[#allocation3 + $0xe0] sm:$0xff]  ;;  %v2146_v4 = vld [vmem:[#allocation3 + $0xd0] sm:$0xff] }
 0x233   :  { %v2022_v60 = vadd.f32 %v592_v12, %v591_v28  ;;  %v1201_v12 = vld [vmem:[#allocation3 + $0xc8] sm:$0xff]  ;;  %v2150_v28 = vld [vmem:[#allocation3 + $0xb8] sm:$0xff] }
 0x235   :  { %616 = vmatmul.f32.vlgmr.msrb.gmra.mxu3 %v2022_v60  ;;  %636 = vmatmul.f32.vlgmr.msrb.gmra.mxu0 %v2022_v60 }
 0x236   :  { %656 = vmatmul.f32.vlgmr.msrb.gmra.mxu1 %v2022_v60  ;;  %808 = vmatpush.msrb.mxu3 %v1476_v38  ;;  %v2043_v38 = vld [vmem:[#allocation3 + $0x120] sm:$0xff] }
 0x237   :  { %852 = vmatpush.msrb.mxu0 %v2028_v32  ;;  %872 = vmatpush.msrb.mxu1 %v1478_v39  ;;  %v2048_v39 = vld [vmem:[#allocation3 + $0x108] sm:$0xff] }
 0x238   :  { %809 = vmatpush.msrb.mxu3 %v1481_v40  ;;  %v2053_v40 = vld [vmem:[#allocation3 + $0xf0] sm:$0xff] }
 0x239   :  { %853 = vmatpush.msrb.mxu0 %v2033_v33  ;;  %873 = vmatpush.msrb.mxu1 %v1485_v42  ;;  %v2058_v42 = vld [vmem:[#allocation3 + $0xd8] sm:$0xff] }
 0x23a   :  { %810 = vmatpush.msrb.mxu3 %v1501_v47  ;;  %v2063_v47 = vld [vmem:[#allocation3 + $0xc0] sm:$0xff] }
 0x23b   :  { %854 = vmatpush.msrb.mxu0 %v2038_v3  ;;  %874 = vmatpush.msrb.mxu1 %v1503_v48  ;;  %v2068_v48 = vld [vmem:[#allocation3 + $0xa8] sm:$0xff] }
 0x23c   :  { %811 = vmatpush.msrb.mxu3 %v1513_v51  ;;  %v2073_v51 = vld [vmem:[#allocation3 + $0x90] sm:$0xff] }
 0x23d   :  { %855 = vmatpush.msrb.mxu0 %v2043_v38  ;;  %875 = vmatpush.msrb.mxu1 %v1515_v52  ;;  %v2078_v52 = vld [vmem:[#allocation3 + $0x78] sm:$0xff] }
 0x23e   :  { %812 = vmatpush.msrb.mxu3 %v1527_v55  ;;  %v2083_v55 = vld [vmem:[#allocation3 + $0x60] sm:$0xff] }
 0x23f   :  { %856 = vmatpush.msrb.mxu0 %v2048_v39  ;;  %876 = vmatpush.msrb.mxu1 %v1529_v56  ;;  %v2088_v56 = vld [vmem:[#allocation3 + $0x48] sm:$0xff] }
 0x240   :  { %813 = vmatpush.msrb.mxu3 %v1537_v58  ;;  %v2093_v58 = vld [vmem:[#allocation3 + $0x30] sm:$0xff] }
 0x241   :  { %857 = vmatpush.msrb.mxu0 %v2053_v40  ;;  %877 = vmatpush.msrb.mxu1 %v1539_v59  ;;  %v2098_v59 = vld [vmem:[#allocation3 + $0x18] sm:$0xff] }
 0x242   :  { %814 = vmatpush.msrb.mxu3 %v1552_v63  ;;  %v2103_v63 = vld [vmem:[#allocation3] sm:$0xff] }
 0x243   :  { %858 = vmatpush.msrb.mxu0 %v2058_v42  ;;  %878 = vmatpush.msrb.mxu1 %v1554_v0 }
 0x244   :  { %815 = vmatpush.msrb.mxu3 %v1564_v6  ;;  %v2283_v6 = vld [vmem:[#allocation31_spill] sm:$0xff] }
 0x245   :  { %859 = vmatpush.msrb.mxu0 %v2063_v47  ;;  %879 = vmatpush.msrb.mxu1 %v1566_v8  ;;  %v211_v8 = vadd.f32 %v2283_v6, %v2272_v26 }
 0x246   :  { %816 = vmatpush.msrb.mxu3 %v1578_v14 }
 0x247   :  { %860 = vmatpush.msrb.mxu0 %v2068_v48  ;;  %880 = vmatpush.msrb.mxu1 %v1580_v16 }
 0x248   :  { %817 = vmatpush.msrb.mxu3 %v1591_v22  ;;  %v2284_v22 = vld [vmem:[#allocation18_spill] sm:$0xff] }
 0x249   :  { %861 = vmatpush.msrb.mxu0 %v2073_v51  ;;  %881 = vmatpush.msrb.mxu1 %v1593_v24 }
 0x24a   :  { %818 = vmatpush.msrb.mxu3 %v1603_v29 }
 0x24b   :  { %862 = vmatpush.msrb.mxu0 %v2078_v52  ;;  %882 = vmatpush.msrb.mxu1 %v1605_v30 }
 0x24c   :  { %819 = vmatpush.msrb.mxu3 %v1615_v34 }
 0x24d   :  { %863 = vmatpush.msrb.mxu0 %v2083_v55  ;;  %883 = vmatpush.msrb.mxu1 %v1617_v35 }
 0x24e   :  { %820 = vmatpush.msrb.mxu3 %v1631_v46 }
 0x24f   :  { %864 = vmatpush.msrb.mxu0 %v2088_v56  ;;  %884 = vmatpush.msrb.mxu1 %v1629_v45 }
 0x250   :  { %821 = vmatpush.msrb.mxu3 %v1644_v57 }
 0x251   :  { %865 = vmatpush.msrb.mxu0 %v2093_v58  ;;  %885 = vmatpush.msrb.mxu1 %v1642_v54 }
 0x252   :  { %822 = vmatpush.msrb.mxu3 %v2274_v1 }
 0x253   :  { %866 = vmatpush.msrb.mxu0 %v2098_v59  ;;  %886 = vmatpush.msrb.mxu1 %v2276_v5 }
 0x254   :  { %823 = vmatpush.msrb.mxu3 %v2277_v7 }
 0x255   :  { %867 = vmatpush.msrb.mxu0 %v2103_v63  ;;  %887 = vmatpush.msrb.mxu1 %v2279_v11  ;;  %v2285_v11 = vld [vmem:[#allocation26_spill] sm:$0xff] }
 0x2b2   :  { %v637_v0 = vpop.f32.mrf.mxu0 }
 0x2b3   :  { %v665_v14 = vadd.f32 %v637_v0, %v211_v8  ;;  %v657_v35 = vpop.f32.mrf.mxu1 }
 0x2b4   :  { %v670_v54 = vadd.f32 %v1874_v18, %v657_v35 }
 0x2b5   :  { %v666_v30 = vmul.f32 0.5, %v665_v14 }
 0x2b8   :  { %v617_v16 = vpop.f32.mrf.mxu3 }
 0x2b9   :  { %v660_v24 = vadd.f32 %v617_v16, %v2284_v22 }
 0x2bb   :  { %v661_v29 = vmul.f32 0.5, %v660_v24 }
 0x2bd   :  { %1138 = vtanh.f32 %v661_v29 }
 0x2be   :  { %1140 = vtanh.f32 %v666_v30 }
 0x2c3   :  { %v1139_v34 = vpop.eup %1138 }
 0x2c4   :  { %v663_v45 = vmul.f32 0.5, %v1139_v34  ;;  %v1141_v46 = vpop.eup %1140 }
 0x2c5   :  { %v668_v9 = vmul.f32 0.5, %v1141_v46 }
 0x2c6   :  { %v664_v57 = vadd.f32 0.5, %v663_v45  ;;  %v2288_v45 = vld [vmem:[#allocation27_spill] sm:$0xff] }
 0x2c7   :  { %v669_v15 = vadd.f32 0.5, %v668_v9 }
 0x2c8   :  { %v671_v5 = vmul.f32 %v670_v54, %v664_v57 }
 0x2c9   :  { %v674_v17 = vsub.f32 1.0, %v669_v15  ;;  %v676_v21 = vmul.f32 %v669_v15, %v2022_v60  ;;  %v1203_v60 = vld [vmem:[#allocation3 + $0xb0] sm:$0xff]  ;;  %v1216_v15 = vld [vmem:[#allocation3 + $0x28] sm:$0xff] }
 0x2ca   :  { %v672_v13 = vadd.f32 %v671_v5, %v2285_v11 }
 0x2cc   :  { %1142 = vtanh.f32 %v672_v13 }
 0x2d2   :  { %v1143_v19 = vpop.eup %1142 }
 0x2d3   :  { %v675_v23 = vmul.f32 %v1143_v19, %v674_v17  ;;  %v1217_v17 = vld [vmem:[#allocation3 + $0x10] sm:$0xff] }
 0x2d5   :  { %v2113_v25 = vadd.f32 %v676_v21, %v675_v23  ;;  %v2289_v21 = vld [vmem:[#allocation20_spill] sm:$0xff] }
 0x2d7   :  { %700 = vmatmul.f32.vlgmr.msrb.gmra.mxu2 %v2113_v25  ;;  %720 = vmatmul.f32.vlgmr.msra.gmra.mxu3 %v2113_v25 }
 0x2d8   :  { %740 = vmatmul.f32.vlgmr.msra.gmra.mxu0 %v2113_v25  ;;  %892 = vmatpush.msrb.mxu2 %v2118_v27 }
 0x2d9   :  { %936 = vmatpush.msra.mxu3 %v2028_v32  ;;  %956 = vmatpush.msra.mxu0 %v1187_v31  ;;  %v2154_v32 = vld [vmem:[#allocation3 + $0xa0] sm:$0xff] }
 0x2da   :  { %893 = vmatpush.msrb.mxu2 %v2122_v2 }
 0x2db   :  { %937 = vmatpush.msra.mxu3 %v2033_v33  ;;  %957 = vmatpush.msra.mxu0 %v1189_v49  ;;  %v1205_v33 = vld [vmem:[#allocation3 + $0x98] sm:$0xff] }
 0x2dc   :  { %894 = vmatpush.msrb.mxu2 %v2126_v50 }
 0x2dd   :  { %938 = vmatpush.msra.mxu3 %v2038_v3  ;;  %958 = vmatpush.msra.mxu0 %v1191_v61  ;;  %v2158_v3 = vld [vmem:[#allocation3 + $0x88] sm:$0xff] }
 0x2de   :  { %895 = vmatpush.msrb.mxu2 %v2130_v10 }
 0x2df   :  { %939 = vmatpush.msra.mxu3 %v2043_v38  ;;  %959 = vmatpush.msra.mxu0 %v1193_v44  ;;  %v1207_v38 = vld [vmem:[#allocation3 + $0x80] sm:$0xff] }
 0x2e0   :  { %896 = vmatpush.msrb.mxu2 %v2134_v20 }
 0x2e1   :  { %940 = vmatpush.msra.mxu3 %v2048_v39  ;;  %960 = vmatpush.msra.mxu0 %v1195_v41  ;;  %v1208_v39 = vld [vmem:[#allocation3 + $0x70] sm:$0xff] }
 0x2e2   :  { %897 = vmatpush.msrb.mxu2 %v2138_v53 }
 0x2e3   :  { %941 = vmatpush.msra.mxu3 %v2053_v40  ;;  %961 = vmatpush.msra.mxu0 %v1197_v36  ;;  %v1209_v40 = vld [vmem:[#allocation3 + $0x68] sm:$0xff] }
 0x2e4   :  { %898 = vmatpush.msrb.mxu2 %v2142_v37 }
 0x2e5   :  { %942 = vmatpush.msra.mxu3 %v2058_v42  ;;  %962 = vmatpush.msra.mxu0 %v1199_v43  ;;  %v1210_v42 = vld [vmem:[#allocation3 + $0x58] sm:$0xff]  ;;  %v2291_v43 = vld [vmem:[#allocation28_spill] sm:$0xff] }
 0x2e6   :  { %899 = vmatpush.msrb.mxu2 %v2146_v4 }
 0x2e7   :  { %943 = vmatpush.msra.mxu3 %v2063_v47  ;;  %963 = vmatpush.msra.mxu0 %v1201_v12  ;;  %v1211_v47 = vld [vmem:[#allocation3 + $0x50] sm:$0xff] }
 0x2e8   :  { %900 = vmatpush.msrb.mxu2 %v2150_v28 }
 0x2e9   :  { %944 = vmatpush.msra.mxu3 %v2068_v48  ;;  %964 = vmatpush.msra.mxu0 %v1203_v60  ;;  %v1212_v48 = vld [vmem:[#allocation3 + $0x40] sm:$0xff] }
 0x2ea   :  { %901 = vmatpush.msrb.mxu2 %v2154_v32 }
 0x2eb   :  { %945 = vmatpush.msra.mxu3 %v2073_v51  ;;  %965 = vmatpush.msra.mxu0 %v1205_v33  ;;  %v1213_v51 = vld [vmem:[#allocation3 + $0x38] sm:$0xff] }
 0x2ec   :  { %902 = vmatpush.msrb.mxu2 %v2158_v3 }
 0x2ed   :  { %946 = vmatpush.msra.mxu3 %v2078_v52  ;;  %966 = vmatpush.msra.mxu0 %v1207_v38  ;;  %v1214_v52 = vld [vmem:[#allocation3 + $0x20] sm:$0xff] }
 0x2ee   :  { %903 = vmatpush.msrb.mxu2 %v1208_v39  ;;  %v2292_v38 = vld [vmem:[#allocation34_spill] sm:$0xff] }
 0x2ef   :  { %947 = vmatpush.msra.mxu3 %v2083_v55  ;;  %967 = vmatpush.msra.mxu0 %v1209_v40  ;;  %v1215_v55 = vld [vmem:[#allocation3 + $0x8] sm:$0xff] }
 0x2f0   :  { %904 = vmatpush.msrb.mxu2 %v1210_v42 }
 0x2f1   :  { %948 = vmatpush.msra.mxu3 %v2088_v56  ;;  %968 = vmatpush.msra.mxu0 %v1211_v47  ;;  %v2286_v56 = vld [vmem:[#allocation32_spill] sm:$0xff]  ;;  %v2293_v47 = vld [vmem:[#allocation22_spill] sm:$0xff] }
 0x2f2   :  { %905 = vmatpush.msrb.mxu2 %v1212_v48  ;;  %v214_v0 = vadd.f32 %v2286_v56, %v2272_v26 }
 0x2f3   :  { %949 = vmatpush.msra.mxu3 %v2093_v58  ;;  %969 = vmatpush.msra.mxu0 %v1213_v51  ;;  %v2287_v58 = vld [vmem:[#allocation19_spill] sm:$0xff] }
 0x2f4   :  { %906 = vmatpush.msrb.mxu2 %v2274_v1 }
 0x2f5   :  { %950 = vmatpush.msra.mxu3 %v2098_v59  ;;  %970 = vmatpush.msra.mxu0 %v1214_v52 }
 0x2f6   :  { %907 = vmatpush.msrb.mxu2 %v2277_v7 }
 0x2f7   :  { %951 = vmatpush.msra.mxu3 %v2103_v63  ;;  %971 = vmatpush.msra.mxu0 %v1215_v55 }
 0x355   :  { %v741_v24 = vpop.f32.mrf.mxu0 }
 0x356   :  { %v754_v63 = vadd.f32 %v1874_v18, %v741_v24 }
 0x35a   :  { %v701_v6 = vpop.f32.mrf.mxu2  ;;  %v721_v8 = vpop.f32.mrf.mxu3 }
 0x35b   :  { %v744_v14 = vadd.f32 %v701_v6, %v2287_v58  ;;  %v749_v16 = vadd.f32 %v721_v8, %v214_v0 }
 0x35d   :  { %v745_v22 = vmul.f32 0.5, %v744_v14  ;;  %v750_v1 = vmul.f32 0.5, %v749_v16 }
 0x35f   :  { %1144 = vtanh.f32 %v745_v22 }
 0x360   :  { %1146 = vtanh.f32 %v750_v1  ;;  %v2294_v1 = vld [vmem:[#allocation29_spill] sm:$0xff] }
 0x365   :  { %v1145_v59 = vpop.eup %1144 }
 0x366   :  { %v747_v29 = vmul.f32 0.5, %v1145_v59  ;;  %v1147_v7 = vpop.eup %1146 }
 0x367   :  { %v752_v35 = vmul.f32 0.5, %v1147_v7 }
 0x368   :  { %v748_v30 = vadd.f32 0.5, %v747_v29 }
 0x369   :  { %v753_v54 = vadd.f32 0.5, %v752_v35  ;;  %v1029_v35 = vld [vmem:[#allocation5 + $0x78] sm:$0xff] }
 0x36a   :  { %v755_v34 = vmul.f32 %v754_v63, %v748_v30 }
 0x36b   :  { %v758_v57 = vsub.f32 1.0, %v753_v54  ;;  %v760_v11 = vmul.f32 %v753_v54, %v2113_v25  ;;  %v1026_v54 = vld [vmem:[#allocation5 + $0x60] sm:$0xff] }
 0x36c   :  { %v756_v46 = vadd.f32 %v755_v34, %v2288_v45  ;;  %v1028_v45 = vld [vmem:[#allocation5 + $0x70] sm:$0xff] }
 0x36e   :  { %1148 = vtanh.f32 %v756_v46  ;;  %v1027_v46 = vld [vmem:[#allocation5 + $0x68] sm:$0xff] }
 0x374   :  { %v1149_v5 = vpop.eup %1148 }
 0x375   :  { %v759_v9 = vmul.f32 %v1149_v5, %v758_v57  ;;  %v1025_v57 = vld [vmem:[#allocation5 + $0x58] sm:$0xff]  ;;  %v1024_v5 = vld [vmem:[#allocation5 + $0x50] sm:$0xff] }
 0x377   :  { %v761_v13 = vadd.f32 %v760_v11, %v759_v9  ;;  %v1023_v9 = vld [vmem:[#allocation5 + $0x48] sm:$0xff]  ;;  %v1022_v11 = vld [vmem:[#allocation5 + $0x40] sm:$0xff] }
 0x379   :  { %784 = vmatmul.f32.vlgmr.msra.gmra.mxu1 %v761_v13  ;;  %804 = vmatmul.f32.vlgmr.msra.gmra.mxu2 %v761_v13 }
 0x37a   :  { %824 = vmatmul.f32.vlgmr.msrb.gmra.mxu3 %v761_v13  ;;  %976 = vmatpush.msra.mxu1 %v2118_v27  ;;  %v2290_v27 = vld [vmem:[#allocation33_spill] sm:$0xff] }
 0x37b   :  { %v217_v31 = vadd.f32 %v2290_v27, %v2272_v26  ;;  %1034 = vmatpush.msra.mxu2 %v1029_v35  ;;  %v1014_v27 = vld [vmem:[#allocation5] sm:$0xff] }
 0x37c   :  { %977 = vmatpush.msra.mxu1 %v2122_v2 }
 0x37d   :  { %1035 = vmatpush.msra.mxu2 %v1028_v45 }
 0x37e   :  { %978 = vmatpush.msra.mxu1 %v2126_v50 }
 0x37f   :  { %1036 = vmatpush.msra.mxu2 %v1027_v46 }
 0x380   :  { %979 = vmatpush.msra.mxu1 %v2130_v10 }
 0x381   :  { %1037 = vmatpush.msra.mxu2 %v1026_v54 }
 0x382   :  { %980 = vmatpush.msra.mxu1 %v2134_v20 }
 0x383   :  { %1038 = vmatpush.msra.mxu2 %v1025_v57 }
 0x384   :  { %981 = vmatpush.msra.mxu1 %v2138_v53 }
 0x385   :  { %1039 = vmatpush.msra.mxu2 %v1024_v5 }
 0x386   :  { %982 = vmatpush.msra.mxu1 %v2142_v37 }
 0x387   :  { %1040 = vmatpush.msra.mxu2 %v1023_v9 }
 0x388   :  { %983 = vmatpush.msra.mxu1 %v2146_v4 }
 0x389   :  { %1041 = vmatpush.msra.mxu2 %v1022_v11 }
 0x38a   :  { %984 = vmatpush.msra.mxu1 %v2150_v28 }
 0x38c   :  { %985 = vmatpush.msra.mxu1 %v2154_v32 }
 0x38e   :  { %986 = vmatpush.msra.mxu1 %v2158_v3 }
 0x390   :  { %987 = vmatpush.msra.mxu1 %v1208_v39  ;;  %v220_v39 = vadd.f32 %v2292_v38, %v2272_v26 }
 0x392   :  { %988 = vmatpush.msra.mxu1 %v1210_v42 }
 0x394   :  { %989 = vmatpush.msra.mxu1 %v1212_v48 }
 0x396   :  { %990 = vmatpush.msra.mxu1 %v1216_v15  ;;  %v1020_v15 = vld [vmem:[#allocation5 + $0x30] sm:$0xff] }
 0x398   :  { %991 = vmatpush.msra.mxu1 %v1217_v17  ;;  %v1019_v17 = vld [vmem:[#allocation5 + $0x28] sm:$0xff] }
 0x3f6   :  { %v785_v19 = vpop.f32.mrf.mxu1 }
 0x3f7   :  { %v828_v23 = vadd.f32 %v785_v19, %v2289_v21  ;;  %v1018_v19 = vld [vmem:[#allocation5 + $0x20] sm:$0xff]  ;;  %v1017_v21 = vld [vmem:[#allocation5 + $0x18] sm:$0xff] }
 0x3f9   :  { %v829_v25 = vmul.f32 0.5, %v828_v23  ;;  %v1016_v23 = vld [vmem:[#allocation5 + $0x10] sm:$0xff] }
 0x3fb   :  { %1150 = vtanh.f32 %v829_v25  ;;  %v1015_v25 = vld [vmem:[#allocation5 + $0x8] sm:$0xff] }
 0x3fc   :  { %v805_v2 = vpop.f32.mrf.mxu2 }
 0x3fd   :  { %v833_v49 = vadd.f32 %v805_v2, %v217_v31  ;;  %v825_v10 = vpop.f32.mrf.mxu3  ;;  %v2295_v2 = vld [vmem:[#allocation35_spill] sm:$0xff] }
 0x3fe   :  { %v838_v41 = vadd.f32 %v1874_v18, %v825_v10 }
 0x3ff   :  { %v834_v50 = vmul.f32 0.5, %v833_v49  ;;  %v223_v49 = vadd.f32 %v2295_v2, %v2272_v26  ;;  %v1064_v26 = vld [vmem:[#allocation7 + $0x48] sm:$0xff] }
 0x401   :  { %v1151_v61 = vpop.eup %1150  ;;  %1152 = vtanh.f32 %v834_v50  ;;  %v1070_v50 = vld [vmem:[#allocation7 + $0x78] sm:$0xff] }
 0x402   :  { %v831_v44 = vmul.f32 0.5, %v1151_v61  ;;  %v1069_v61 = vld [vmem:[#allocation7 + $0x70] sm:$0xff]  ;;  %1075 = vmatpush.msrb.mxu3 %v1070_v50 }
 0x404   :  { %v832_v20 = vadd.f32 0.5, %v831_v44  ;;  %1076 = vmatpush.msrb.mxu3 %v1069_v61 }
 0x406   :  { %v839_v53 = vmul.f32 %v838_v41, %v832_v20  ;;  %v2296_v20 = vld [vmem:[#allocation24_spill] sm:$0xff] }
 0x407   :  { %v1153_v36 = vpop.eup %1152 }
 0x408   :  { %v836_v37 = vmul.f32 0.5, %v1153_v36  ;;  %v840_v4 = vadd.f32 %v839_v53, %v2291_v43  ;;  %v1068_v53 = vld [vmem:[#allocation7 + $0x68] sm:$0xff] }
 0x409   :  { %1077 = vmatpush.msrb.mxu3 %v1068_v53 }
 0x40a   :  { %1154 = vtanh.f32 %v840_v4  ;;  %v837_v12 = vadd.f32 0.5, %v836_v37  ;;  %v1067_v37 = vld [vmem:[#allocation7 + $0x60] sm:$0xff]  ;;  %v1066_v4 = vld [vmem:[#allocation7 + $0x58] sm:$0xff] }
 0x40b   :  { %1078 = vmatpush.msrb.mxu3 %v1067_v37 }
 0x40c   :  { %v842_v28 = vsub.f32 1.0, %v837_v12  ;;  %v844_v32 = vmul.f32 %v837_v12, %v761_v13  ;;  %v1021_v13 = vld [vmem:[#allocation5 + $0x38] sm:$0xff]  ;;  %v1065_v12 = vld [vmem:[#allocation7 + $0x50] sm:$0xff] }
 0x40d   :  { %1042 = vmatpush.msra.mxu2 %v1021_v13  ;;  %1079 = vmatpush.msrb.mxu3 %v1066_v4 }
 0x40f   :  { %1043 = vmatpush.msra.mxu2 %v1020_v15  ;;  %1080 = vmatpush.msrb.mxu3 %v1065_v12 }
 0x410   :  { %v1155_v60 = vpop.eup %1154 }
 0x411   :  { %v843_v33 = vmul.f32 %v1155_v60, %v842_v28  ;;  %1044 = vmatpush.msra.mxu2 %v1019_v17  ;;  %1081 = vmatpush.msrb.mxu3 %v1064_v26 }
 0x413   :  { %v845_v3 = vadd.f32 %v844_v32, %v843_v33  ;;  %1045 = vmatpush.msra.mxu2 %v1018_v19  ;;  %v1063_v32 = vld [vmem:[#allocation7 + $0x40] sm:$0xff] }
 0x414   :  { %1082 = vmatpush.msrb.mxu3 %v1063_v32 }
 0x415   :  { %868 = vmatmul.f32.vlgmr.msrb.gmra.mxu0 %v845_v3  ;;  %888 = vmatmul.f32.vlgmr.msrb.gmra.mxu1 %v845_v3 }
 0x416   :  { %908 = vmatmul.f32.vlgmr.msrb.gmra.mxu2 %v845_v3 }
 0x417   :  { %1046 = vmatpush.msra.mxu2 %v1017_v21 }
 0x419   :  { %1047 = vmatpush.msra.mxu2 %v1016_v23 }
 0x41b   :  { %1048 = vmatpush.msra.mxu2 %v1015_v25 }
 0x41d   :  { %1049 = vmatpush.msra.mxu2 %v1014_v27 }
 0x492   :  { %v869_v40 = vpop.f32.mrf.mxu0  ;;  %v889_v42 = vpop.f32.mrf.mxu1 }
 0x493   :  { %v912_v48 = vadd.f32 %v869_v40, %v2293_v47  ;;  %v917_v51 = vadd.f32 %v889_v42, %v220_v39  ;;  %v1061_v42 = vld [vmem:[#allocation7 + $0x30] sm:$0xff] }
 0x494   :  { %v2297_v47 = vld [vmem:[#allocation36_spill] sm:$0xff] }
 0x495   :  { %v913_v52 = vmul.f32 0.5, %v912_v48  ;;  %v918_v55 = vmul.f32 0.5, %v917_v51  ;;  %v264_v48 = vadd.f32 %v2297_v47, %v1866_v62  ;;  %v1057_v62 = vld [vmem:[#allocation7 + $0x10] sm:$0xff] }
 0x497   :  { %1156 = vtanh.f32 %v913_v52 }
 0x498   :  { %1158 = vtanh.f32 %v918_v55  ;;  %v1060_v55 = vld [vmem:[#allocation7 + $0x28] sm:$0xff] }
 0x499   :  { %v909_v0 = vpop.f32.mrf.mxu2 }
 0x49a   :  { %v922_v14 = vadd.f32 %v1874_v18, %v909_v0 }
 0x49d   :  { %v1157_v56 = vpop.eup %1156 }
 0x49e   :  { %v915_v6 = vmul.f32 0.5, %v1157_v56  ;;  %v1159_v8 = vpop.eup %1158 }
 0x49f   :  { %v920_v22 = vmul.f32 0.5, %v1159_v8 }
 0x4a0   :  { %v916_v58 = vadd.f32 0.5, %v915_v6 }
 0x4a1   :  { %v921_v24 = vadd.f32 0.5, %v920_v22  ;;  %v1058_v22 = vld [vmem:[#allocation7 + $0x18] sm:$0xff] }
 0x4a2   :  { %v923_v16 = vmul.f32 %v922_v14, %v916_v58 }
 0x4a3   :  { %v926_v29 = vsub.f32 1.0, %v921_v24  ;;  %v928_v63 = vmul.f32 %v921_v24, %v845_v3  ;;  %v1062_v3 = vld [vmem:[#allocation7 + $0x38] sm:$0xff]  ;;  %v1118_v24 = vld [vmem:[%s2223_s6] ss:$0 sm:$0xff] }
 0x4a4   :  { %v924_v59 = vadd.f32 %v923_v16, %v2294_v1  ;;  %1083 = vmatpush.msrb.mxu3 %v1062_v3  ;;  %v1059_v16 = vld [vmem:[#allocation7 + $0x20] sm:$0xff]  ;;  %v1056_v1 = vld [vmem:[#allocation7 + $0x8] sm:$0xff] }
 0x4a6   :  { %1160 = vtanh.f32 %v924_v59  ;;  %1084 = vmatpush.msrb.mxu3 %v1061_v42  ;;  %v1055_v59 = vld [vmem:[#allocation7] sm:$0xff] }
 0x4a8   :  { %1085 = vmatpush.msrb.mxu3 %v1060_v55 }
 0x4aa   :  { %1086 = vmatpush.msrb.mxu3 %v1059_v16 }
 0x4ac   :  { %v1161_v7 = vpop.eup %1160  ;;  %1087 = vmatpush.msrb.mxu3 %v1058_v22 }
 0x4ad   :  { %v927_v30 = vmul.f32 %v1161_v7, %v926_v29 }
 0x4ae   :  { %1088 = vmatpush.msrb.mxu3 %v1057_v62 }
 0x4af   :  { %v2196_v34 = vadd.f32 %v928_v63, %v927_v30  ;;  %v1119_v30 = vld [vmem:[%s2225_s8] ss:$0 sm:$0xff] }
 0x4b0   :  { %1089 = vmatpush.msrb.mxu3 %v1056_v1 }
 0x4b1   :  { %952 = vmatmul.f32.vlgmr.msra.gmra.mxu3 %v2196_v34  ;;  %972 = vmatmul.f32.vlgmr.msra.gmra.mxu0 %v2196_v34 }
 0x4b2   :  { %992 = vmatmul.f32.vlgmr.msra.gmra.mxu1 %v2196_v34  ;;  %1090 = vmatpush.msrb.mxu3 %v1055_v59 }
 0x52e   :  { %v973_v31 = vpop.f32.mrf.mxu0 }
 0x52f   :  { %v1001_v10 = vadd.f32 %v973_v31, %v223_v49  ;;  %v993_v60 = vpop.f32.mrf.mxu1 }
 0x530   :  { %v1006_v39 = vadd.f32 %v1874_v18, %v993_v60 }
 0x531   :  { %v1002_v43 = vmul.f32 0.5, %v1001_v10 }
 0x534   :  { %v953_v44 = vpop.f32.mrf.mxu3 }
 0x535   :  { %v996_v41 = vadd.f32 %v953_v44, %v2296_v20 }
 0x537   :  { %v997_v36 = vmul.f32 0.5, %v996_v41 }
 0x539   :  { %1162 = vtanh.f32 %v997_v36 }
 0x53a   :  { %1164 = vtanh.f32 %v1002_v43 }
 0x53f   :  { %v1163_v28 = vpop.eup %1162 }
 0x540   :  { %v999_v33 = vmul.f32 0.5, %v1163_v28  ;;  %v1165_v38 = vpop.eup %1164 }
 0x541   :  { %v1004_v52 = vmul.f32 0.5, %v1165_v38 }
 0x542   :  { %v1000_v40 = vadd.f32 0.5, %v999_v33 }
 0x543   :  { %v1005_v0 = vadd.f32 0.5, %v1004_v52 }
 0x544   :  { %v1007_v51 = vmul.f32 %v1006_v39, %v1000_v40 }
 0x545   :  { %v1010_v6 = vsub.f32 1.0, %v1005_v0  ;;  %v1012_v58 = vmul.f32 %v1005_v0, %v2196_v34 }
 0x546   :  { %v1008_v56 = vadd.f32 %v1007_v51, %v264_v48 }
 0x548   :  { %1166 = vtanh.f32 %v1008_v56 }
 0x54e   :  { %v1167_v8 = vpop.eup %1166 }
 0x54f   :  { %v1011_v18 = vmul.f32 %v1167_v8, %v1010_v6 }
 0x551   :  { %v1013_v14 = vadd.f32 %v1012_v58, %v1011_v18 }
 0x553   :  { %1050 = vmatmul.f32.vlgmr.msra.gmra.mxu2 %v1013_v14 }
 0x5d6   :  { %v1051_v29 = vpop.f32.mrf.mxu2 }
 0x5d7   :  { %v1052_v7 = vadd.f32 %v1118_v24, %v1051_v29 }
 0x5d9   :  { %1168 = vtanh.f32 %v1052_v7 }
 0x5df   :  { %v1169_v63 = vpop.eup %1168 }
 0x5e0   :  { %1091 = vmatmul.f32.vlgmr.msrb.gmra.mxu3 %v1169_v63 }
 0x663   :  { %v1092_v34 = vpop.f32.mrf.mxu3 }
 0x664   :  { %v1093_v35 = vadd.f32 %v1119_v30, %v1092_v34 }
 0x666   :  { %1095 = vst [vmem:[%s2226_s9] sm:$0xff] %v1093_v35 }
 0x667   :  { %1100 = vsyncpa [#allocation4], 1 }
 0x668   :  { %1101 = vsyncpa [#allocation6], 1 }

</bundles_post_ra>
